<compile_context>
chip_gen: v7x
topology: tpu7x:2x2x1
jax: 0.10.0
libtpu: 0.0.40
codegen_flags: <defaults>
</compile_context>

<pallas_src>
import functools
import math

import jax
import jax.numpy as jnp
from jax.experimental import pallas as pl
from jax.experimental.pallas import tpu as pltpu

LN_EPS = 1e-5

# HBM storage / MXU-input dtype for activations and the big matmul weights.
# All softmax / LayerNorm / residual math is done in float32 inside the
# kernels.  Set to jnp.float32 for strict numerical parity with PyTorch.
ACT_DTYPE = jnp.bfloat16


def _vmem_limit_bytes():
    """Generation-aware scoped-VMEM budget.

    48 MiB is safe on every generation (v7x has 64 MiB per TensorCore); bump
    to 96 MiB on the 128 MiB-VMEM parts (v5e / v6e) so larger row tiles can
    pipeline closer to the HBM roofline.
    """
    limit = 48 * 1024 * 1024
    try:
        kind = jax.devices()[0].device_kind.lower()
        if any(t in kind for t in ("v5 lite", "v5e", "v5litepod", "v6")):
            limit = 96 * 1024 * 1024
    except Exception:
        pass
    return limit


VMEM_LIMIT = _vmem_limit_bytes()


def _cparams(*sem):
    return pltpu.CompilerParams(dimension_semantics=sem,
                                vmem_limit_bytes=VMEM_LIMIT)


def _row_tile(m, cap=512):
    """Largest sublane-aligned divisor of m that is <= cap and, when m allows,
    yields >= 2 grid steps (so both v7x TensorCores get work)."""
    cap = min(cap, m)
    if m >= 16:
        cap = min(cap, m // 2)          # guarantee >= 2 grid steps
    t = max(8, (cap // 8) * 8)
    while t >= 8:
        if m % t == 0:
            return t
        t -= 8
    # TODO(synk): pad + mask rows when m has no sublane-aligned divisor
    # (e.g. L = 14*14 = 196); a single full-extent block is correct but
    # unpipelined and single-core.
    return m


# ----------------------------------------------------------------------------
# Kernel 1: 1x1 conv (per-pixel linear) + (positional encoding + bias) add
# ----------------------------------------------------------------------------
def _conv_pe_kernel(x_ref, w_ref, bpe_ref, o_ref):
    x = x_ref[0].astype(jnp.float32)           # [tl, F]
    w = w_ref[...].astype(jnp.float32)         # [F, C]
    acc = bpe_ref[...].astype(jnp.float32)     # [tl, C] = pe tile + conv bias
    f_dim = x.shape[1]
    if f_dim <= 16:
        # Tiny CNN channel count: a depth-F MXU push would run at ~F/256 of
        # peak, so do the 1x1 conv as F rank-1 VPU updates instead.
        for f in range(f_dim):
            acc = acc + x[:, f:f + 1] * w[f:f + 1, :]
    else:
        acc = acc + jnp.dot(x, w, preferred_element_type=jnp.float32)
    o_ref[0] = acc.astype(o_ref.dtype)


def conv1x1_pe(x, w, b, pe):
    """x: [B2, L, F] -> [B2, L, C]; (pe[l] + conv bias) added per row."""
    B2, L, F = x.shape
    C = w.shape[1]
    tl = _row_tile(L)
    bias_pe = pe[:L].astype(jnp.float32) + b[None, :].astype(jnp.float32)
    return pl.pallas_call(
        _conv_pe_kernel,
        out_shape=jax.ShapeDtypeStruct((B2, L, C), ACT_DTYPE),
        grid=(L // tl, B2),     # L-tiles outer so the pe/bias tile stays resident
        in_specs=[
            pl.BlockSpec((1, tl, F), lambda li, bi: (bi, li, 0)),
            pl.BlockSpec((F, C), lambda li, bi: (0, 0)),
            pl.BlockSpec((tl, C), lambda li, bi: (li, 0)),
        ],
        out_specs=pl.BlockSpec((1, tl, C), lambda li, bi: (bi, li, 0)),
        compiler_params=_cparams("parallel", "parallel"),
    )(x, w, bias_pe)


# ----------------------------------------------------------------------------
# Kernel 2: fused QKV projection (single matmul against packed [C, 3C] weight)
# ----------------------------------------------------------------------------
def _qkv_kernel(x_ref, w_ref, b_ref, q_ref, kv_ref, *, C):
    y = jnp.dot(x_ref[...], w_ref[...], preferred_element_type=jnp.float32)
    y = y + b_ref[...]
    q_ref[...] = y[:, :C].astype(q_ref.dtype)
    kv_ref[...] = y[:, C:].astype(kv_ref.dtype)


def qkv_proj(x, w_qkv, b_qkv):
    """x: [M, C] -> (q [M, C], kv [M, 2C]) with one packed [C, 3C] matmul."""
    M, C = x.shape
    C3 = w_qkv.shape[1]
    Cq = C3 // 3
    tm = _row_tile(M)
    return pl.pallas_call(
        functools.partial(_qkv_kernel, C=Cq),
        out_shape=(jax.ShapeDtypeStruct((M, Cq), ACT_DTYPE),
                   jax.ShapeDtypeStruct((M, 2 * Cq), ACT_DTYPE)),
        grid=(M // tm,),
        in_specs=[
            pl.BlockSpec((tm, C), lambda i: (i, 0)),
            pl.BlockSpec((C, C3), lambda i: (0, 0)),
            pl.BlockSpec((1, C3), lambda i: (0, 0)),
        ],
        out_specs=(pl.BlockSpec((tm, Cq), lambda i: (i, 0)),
                   pl.BlockSpec((tm, 2 * Cq), lambda i: (i, 0))),
        compiler_params=_cparams("parallel"),
    )(x, w_qkv, b_qkv.reshape(1, C3).astype(jnp.float32))


# ----------------------------------------------------------------------------
# Kernel 3 (fused): cross-attention over a q-row tile + out-projection +
# residual + LayerNorm1 + FFN + residual + LayerNorm2.
# ----------------------------------------------------------------------------
def _layernorm(y, g, b, eps):
    mean = jnp.mean(y, axis=-1, keepdims=True)
    var = jnp.mean(jnp.square(y - mean), axis=-1, keepdims=True)
    return (y - mean) * jax.lax.rsqrt(var + eps) * g + b


def _attn_ffn_kernel(q_ref, kv_ref, x_ref, wo_ref, w1_ref, w2_ref, vec_ref,
                     b1_ref, o_ref, acc_ref, *, nhead, scale, eps):
    C = q_ref.shape[-1]
    dh = C // nhead

    # --- multi-head cross attention for this q-row tile.  The partner
    # stream's keys/values arrive via the BlockSpec index_map (no data
    # movement); softmax scale is folded into q.  Per-head results are written
    # straight into a VMEM scratch accumulator (no concatenate, bounded vreg
    # live ranges).
    # TODO(synk): pack several heads per MXU pass / pad the contraction when
    # dh << 128 — depth-dh contractions under-utilize the systolic array.
    for h in range(nhead):
        lo, hi = h * dh, (h + 1) * dh
        qh = q_ref[0, :, lo:hi].astype(jnp.float32) * scale        # [tq, dh]
        kh = kv_ref[0, :, lo:hi]                                   # [L, dh]
        vh = kv_ref[0, :, C + lo:C + hi]                           # [L, dh]
        s = jax.lax.dot_general(qh.astype(kh.dtype), kh,
                                (((1,), (1,)), ((), ())),
                                preferred_element_type=jnp.float32)  # [tq, L]
        s = s - jnp.max(s, axis=-1, keepdims=True)
        p = jnp.exp(s)
        p = p * pl.reciprocal(jnp.sum(p, axis=-1, keepdims=True), approx=False)
        acc_ref[:, lo:hi] = jnp.dot(p.astype(vh.dtype), vh,
                                    preferred_element_type=jnp.float32)

    attn = acc_ref[...]                                            # [tq, C] f32
    bo = vec_ref[0:1, :]
    g1 = vec_ref[1:2, :]
    be1 = vec_ref[2:3, :]
    b2 = vec_ref[3:4, :]
    g2 = vec_ref[4:5, :]
    be2 = vec_ref[5:6, :]

    # --- attention out-projection + residual + LayerNorm1 (post-norm)
    y = jnp.dot(attn.astype(wo_ref.dtype), wo_ref[...],
                preferred_element_type=jnp.float32)
    y = y + bo + x_ref[0].astype(jnp.float32)
    y = _layernorm(y, g1, be1, eps)

    # --- FFN (hidden never leaves VMEM/vregs) + residual + LayerNorm2
    hid = jnp.dot(y.astype(w1_ref.dtype), w1_ref[...],
                  preferred_element_type=jnp.float32) + b1_ref[...]
    hid = jnp.maximum(hid, 0.0)
    z = jnp.dot(hid.astype(w2_ref.dtype), w2_ref[...],
                preferred_element_type=jnp.float32) + b2 + y
    z = _layernorm(z, g2, be2, eps)
    o_ref[0] = z.astype(o_ref.dtype)


def attn_ffn_block(q, kv, x, p, nhead):
    """Fused attention tail for one layer.

    q, x: [B, L, C]; kv: [B, L, 2C].  Batch b attends to the kv of batch
    (b + B/2) % B (before <-> after swap), expressed purely in the index_map.
    """
    B, L, C = q.shape
    H = p["w1"].shape[1]
    half = B // 2
    scale = 1.0 / math.sqrt(C // nhead)
    tq = _row_tile(L)
    # Pack the six C-length vectors into one [8, C] tensor (fewer DMA streams).
    vecs = jnp.stack(
        [p["bo"], p["ln1_g"], p["ln1_b"], p["b2"], p["ln2_g"], p["ln2_b"],
         jnp.zeros((C,), jnp.float32), jnp.zeros((C,), jnp.float32)],
        axis=0).astype(jnp.float32)
    # NOTE: the constant-index weight specs below are double-buffered by
    # default; at large C, single-buffering them (pl.Buffered(1)) or a one-time
    # DMA into scratch would free VMEM for bigger row tiles.
    return pl.pallas_call(
        functools.partial(_attn_ffn_kernel, nhead=nhead, scale=scale,
                          eps=LN_EPS),
        out_shape=jax.ShapeDtypeStruct((B, L, C), ACT_DTYPE),
        grid=(B, L // tq),
        in_specs=[
            pl.BlockSpec((1, tq, C), lambda b, i: (b, i, 0)),          # q tile
            pl.BlockSpec((1, L, 2 * C),
                         lambda b, i: ((b + half) % B, 0, 0)),         # partner kv
            pl.BlockSpec((1, tq, C), lambda b, i: (b, i, 0)),          # residual
            pl.BlockSpec((C, C), lambda b, i: (0, 0)),                 # wo
            pl.BlockSpec((C, H), lambda b, i: (0, 0)),                 # w1
            pl.BlockSpec((H, C), lambda b, i: (0, 0)),                 # w2
            pl.BlockSpec((8, C), lambda b, i: (0, 0)),                 # packed vecs
            pl.BlockSpec((1, H), lambda b, i: (0, 0)),                 # b1
        ],
        out_specs=pl.BlockSpec((1, tq, C), lambda b, i: (b, i, 0)),
        scratch_shapes=[pltpu.VMEM((tq, C), jnp.float32)],
        compiler_params=_cparams("parallel", "parallel"),
    )(q, kv, x,
      p["wo"].astype(ACT_DTYPE), p["w1"].astype(ACT_DTYPE),
      p["w2"].astype(ACT_DTYPE), vecs,
      p["b1"].reshape(1, H).astype(jnp.float32))


# ----------------------------------------------------------------------------
# Model glue (XLA only does cheap reshapes / small transposes / dtype casts)
# ----------------------------------------------------------------------------
def coattention_layer(x_all, p, nhead):
    """x_all: [2N, L, C].  Both streams share all layer weights, so they run
    through the same pallas_calls (one weight DMA, half the launches)."""
    B2, L, C = x_all.shape
    x_flat = x_all.reshape(B2 * L, C)
    q, kv = qkv_proj(x_flat, p["w_qkv"].astype(ACT_DTYPE), p["b_qkv"])
    return attn_ffn_block(q.reshape(B2, L, C), kv.reshape(B2, L, 2 * C),
                          x_all, p, nhead)


def mccformer_encoder_d_forward(x1, x2, params, nhead):
    """x1, x2: [N, F, H, W]  ->  output [H*W, N, 2*C]."""
    N, F, H, W = x1.shape
    L = H * W
    feats = jnp.concatenate([x1, x2], axis=0)                  # [2N, F, H, W]
    # 1x1 conv == per-pixel linear; permute first so the PE add fuses per-row.
    x = feats.reshape(2 * N, F, L).transpose(0, 2, 1)          # [2N, L, F]
    x_all = conv1x1_pe(x, params["conv_w"], params["conv_b"],
                       params["pe"])                           # [2N, L, C]
    for lp in params["layers"]:
        x_all = coattention_layer(x_all, lp, nhead)
    x_all = x_all.astype(jnp.float32)
    before = x_all[:N].transpose(1, 0, 2)                      # [L, N, C]
    after = x_all[N:].transpose(1, 0, 2)                       # [L, N, C]
    return jnp.concatenate([before, after], axis=2)            # [L, N, 2C]


# ----------------------------------------------------------------------------
# Deterministic parameter init (synthetic, not a checkpoint)
# ----------------------------------------------------------------------------
def init_params(key, feature_dim, encoder_dim, image_size, num_layers):
    C, F = encoder_dim, feature_dim
    hidden = 4 * encoder_dim
    keys = jax.random.split(key, 4 + num_layers)

    def w(k, shape, scale=0.02):
        return (scale * jax.random.normal(k, shape)).astype(jnp.float32)

    params = {
        "conv_w": w(keys[0], (F, C)),
        "conv_b": jnp.zeros((C,), jnp.float32),
        "pe": w(keys[1], (image_size ** 2, C), scale=1.0),  # torch.randn(max_len,1,C)
        "layers": [],
    }
    for li in range(num_layers):
        lk = jax.random.split(keys[4 + li], 6)
        params["layers"].append({
            "w_qkv": w(lk[0], (C, 3 * C)), "b_qkv": jnp.zeros((3 * C,), jnp.float32),
            "wo": w(lk[1], (C, C)), "bo": jnp.zeros((C,), jnp.float32),
            "w1": w(lk[2], (C, hidden)), "b1": jnp.zeros((hidden,), jnp.float32),
            "w2": w(lk[3], (hidden, C)), "b2": jnp.zeros((C,), jnp.float32),
            "ln1_g": jnp.ones((C,), jnp.float32), "ln1_b": jnp.zeros((C,), jnp.float32),
            "ln2_g": jnp.ones((C,), jnp.float32), "ln2_b": jnp.zeros((C,), jnp.float32),
        })
    return params


# ----------------------------------------------------------------------------
if __name__ == "__main__":
    # Small config: feature_dim=4, encoder_dim=32, image_size=8 (L=64),
    # nhead=4, transformer_layer_num=2, batch N=2.
    N, FEAT, IMG = 2, 4, 8
    ENC, NHEAD, NLAYERS = 32, 4, 2

    root = jax.random.PRNGKey(0)
    k_x1, k_x2, k_p = jax.random.split(root, 3)
    x1 = jax.random.normal(k_x1, (N, FEAT, IMG, IMG), dtype=jnp.float32)
    x2 = jax.random.normal(k_x2, (N, FEAT, IMG, IMG), dtype=jnp.float32)
    params = init_params(k_p, FEAT, ENC, IMG, NLAYERS)

    fwd = jax.jit(functools.partial(mccformer_encoder_d_forward, nhead=NHEAD))
    out = jax.block_until_ready(fwd(x1, x2, params))

    assert out.shape == (IMG * IMG, N, 2 * ENC), out.shape
    assert bool(jnp.all(jnp.isfinite(out)))
    print("KERNEL_OK")
</pallas_src>

<mosaic_0001>
module attributes {stable_mosaic.version = 11 : i64} {
  func.func @_conv_pe_kernel(%arg0: i32, %arg1: i32, %arg2: memref<1x32x4xf32, #tpu.memory_space<vmem>>, %arg3: memref<4x32xf32, #tpu.memory_space<vmem>>, %arg4: memref<32x32xf32, #tpu.memory_space<vmem>>, %arg5: memref<1x32x32xbf16, #tpu.memory_space<vmem>>) attributes {dimension_semantics = [#tpu.dimension_semantics<parallel>, #tpu.dimension_semantics<parallel>], iteration_bounds = array<i64: 2, 4>, scalar_prefetch = 0 : i64, scratch_operands = 0 : i64, tpu.core_type = #tpu.core_type<tc>, window_params = [{transform_indices = @transform_0, window_bounds = array<i64: 1, 32, 4>}, {pipeline_mode = #tpu.pipeline_mode<synchronous>, transform_indices = @transform_1, window_bounds = array<i64: 4, 32>}, {transform_indices = @transform_2, window_bounds = array<i64: 32, 32>}, {transform_indices = @transform_3, window_bounds = array<i64: 1, 32, 32>}]} {
    %c0 = arith.constant 0 : index
    %c0_0 = arith.constant 0 : index
    %c0_1 = arith.constant 0 : index
    %0 = vector.load %arg2[%c0, %c0_0, %c0_1] : memref<1x32x4xf32, #tpu.memory_space<vmem>>, vector<1x32x4xf32>
    %1 = vector.shape_cast %0 : vector<1x32x4xf32> to vector<32x4xf32>
    %c0_2 = arith.constant 0 : index
    %c0_3 = arith.constant 0 : index
    %2 = vector.load %arg3[%c0_2, %c0_3] : memref<4x32xf32, #tpu.memory_space<vmem>>, vector<4x32xf32>
    %c0_4 = arith.constant 0 : index
    %c0_5 = arith.constant 0 : index
    %3 = vector.load %arg4[%c0_4, %c0_5] : memref<32x32xf32, #tpu.memory_space<vmem>>, vector<32x32xf32>
    %4 = vector.extract_strided_slice %1 {offsets = [0, 0], sizes = [32, 1], strides = [1, 1]} : vector<32x4xf32> to vector<32x1xf32>
    %5 = vector.extract_strided_slice %2 {offsets = [0, 0], sizes = [1, 32], strides = [1, 1]} : vector<4x32xf32> to vector<1x32xf32>
    %6 = vector.broadcast %4 : vector<32x1xf32> to vector<32x32xf32>
    %7 = vector.broadcast %5 : vector<1x32xf32> to vector<32x32xf32>
    %8 = arith.mulf %6, %7 : vector<32x32xf32>
    %9 = arith.addf %3, %8 : vector<32x32xf32>
    %10 = vector.extract_strided_slice %1 {offsets = [0, 1], sizes = [32, 1], strides = [1, 1]} : vector<32x4xf32> to vector<32x1xf32>
    %11 = vector.extract_strided_slice %2 {offsets = [1, 0], sizes = [1, 32], strides = [1, 1]} : vector<4x32xf32> to vector<1x32xf32>
    %12 = vector.broadcast %10 : vector<32x1xf32> to vector<32x32xf32>
    %13 = vector.broadcast %11 : vector<1x32xf32> to vector<32x32xf32>
    %14 = arith.mulf %12, %13 : vector<32x32xf32>
    %15 = arith.addf %9, %14 : vector<32x32xf32>
    %16 = vector.extract_strided_slice %1 {offsets = [0, 2], sizes = [32, 1], strides = [1, 1]} : vector<32x4xf32> to vector<32x1xf32>
    %17 = vector.extract_strided_slice %2 {offsets = [2, 0], sizes = [1, 32], strides = [1, 1]} : vector<4x32xf32> to vector<1x32xf32>
    %18 = vector.broadcast %16 : vector<32x1xf32> to vector<32x32xf32>
    %19 = vector.broadcast %17 : vector<1x32xf32> to vector<32x32xf32>
    %20 = arith.mulf %18, %19 : vector<32x32xf32>
    %21 = arith.addf %15, %20 : vector<32x32xf32>
    %22 = vector.extract_strided_slice %1 {offsets = [0, 3], sizes = [32, 1], strides = [1, 1]} : vector<32x4xf32> to vector<32x1xf32>
    %23 = vector.extract_strided_slice %2 {offsets = [3, 0], sizes = [1, 32], strides = [1, 1]} : vector<4x32xf32> to vector<1x32xf32>
    %24 = vector.broadcast %22 : vector<32x1xf32> to vector<32x32xf32>
    %25 = vector.broadcast %23 : vector<1x32xf32> to vector<32x32xf32>
    %26 = arith.mulf %24, %25 : vector<32x32xf32>
    %27 = arith.addf %21, %26 : vector<32x32xf32>
    %28 = arith.truncf %27 : vector<32x32xf32> to vector<32x32xbf16>
    %c0_6 = arith.constant 0 : index
    %c0_7 = arith.constant 0 : index
    %c0_8 = arith.constant 0 : index
    %29 = vector.load %arg5[%c0_6, %c0_7, %c0_8] : memref<1x32x32xbf16, #tpu.memory_space<vmem>>, vector<1x32x32xbf16>
    %30 = vector.shape_cast %29 : vector<1x32x32xbf16> to vector<32x32xbf16>
    %31 = vector.shape_cast %28 : vector<32x32xbf16> to vector<1x32x32xbf16>
    tpu.vector_store %arg5[%c0_6, %c0_7, %c0_8], %31 {strides = array<i32>} : memref<1x32x32xbf16, #tpu.memory_space<vmem>>, vector<1x32x32xbf16>,
    return
  }
  func.func @transform_0(%arg0: i32, %arg1: i32) -> (i32, i32, i32) {
    %c0_i32 = arith.constant 0 : i32
    %c0_i32_0 = arith.constant 0 : i32
    return %arg1, %arg0, %c0_i32 : i32, i32, i32
  }
  func.func @transform_1(%arg0: i32, %arg1: i32) -> (i32, i32) {
    %c0_i32 = arith.constant 0 : i32
    %c0_i32_0 = arith.constant 0 : i32
    %c0_i32_1 = arith.constant 0 : i32
    return %c0_i32, %c0_i32_0 : i32, i32
  }
  func.func @transform_2(%arg0: i32, %arg1: i32) -> (i32, i32) {
    %c0_i32 = arith.constant 0 : i32
    %c0_i32_0 = arith.constant 0 : i32
    return %arg0, %c0_i32 : i32, i32
  }
  func.func @transform_3(%arg0: i32, %arg1: i32) -> (i32, i32, i32) {
    %c0_i32 = arith.constant 0 : i32
    %c0_i32_0 = arith.constant 0 : i32
    return %arg1, %arg0, %c0_i32 : i32, i32, i32
  }
}

module attributes {stable_mosaic.version = 11 : i64} {
  func.func @_qkv_kernel(%arg0: i32, %arg1: memref<128x32xbf16, #tpu.memory_space<vmem>>, %arg2: memref<32x96xbf16, #tpu.memory_space<vmem>>, %arg3: memref<1x96xf32, #tpu.memory_space<vmem>>, %arg4: memref<128x32xbf16, #tpu.memory_space<vmem>>, %arg5: memref<128x64xbf16, #tpu.memory_space<vmem>>) attributes {dimension_semantics = [#tpu.dimension_semantics<parallel>], iteration_bounds = array<i64: 2>, scalar_prefetch = 0 : i64, scratch_operands = 0 : i64, tpu.core_type = #tpu.core_type<tc>, window_params = [{transform_indices = @transform_0, window_bounds = array<i64: 128, 32>}, {pipeline_mode = #tpu.pipeline_mode<synchronous>, transform_indices = @transform_1, window_bounds = array<i64: 32, 96>}, {pipeline_mode = #tpu.pipeline_mode<synchronous>, transform_indices = @transform_2, window_bounds = array<i64: 1, 96>}, {transform_indices = @transform_3, window_bounds = array<i64: 128, 32>}, {transform_indices = @transform_4, window_bounds = array<i64: 128, 64>}]} {
    %c0 = arith.constant 0 : index
    %c0_0 = arith.constant 0 : index
    %0 = vector.load %arg1[%c0, %c0_0] : memref<128x32xbf16, #tpu.memory_space<vmem>>, vector<128x32xbf16>
    %c0_1 = arith.constant 0 : index
    %c0_2 = arith.constant 0 : index
    %1 = vector.load %arg2[%c0_1, %c0_2] : memref<32x96xbf16, #tpu.memory_space<vmem>>, vector<32x96xbf16>
    %cst = arith.constant dense<0.000000e+00> : vector<128x96xf32>
    %2 = tpu.matmul %0, %1, %cst {dimension_numbers = #tpu.dot_dimension_numbers<[1], [0], [0], [1], [0, 0, 1, 1], [], []>} : vector<128x32xbf16>, vector<32x96xbf16>, vector<128x96xf32> -> vector<128x96xf32>
    %c0_3 = arith.constant 0 : index
    %c0_4 = arith.constant 0 : index
    %3 = vector.load %arg3[%c0_3, %c0_4] : memref<1x96xf32, #tpu.memory_space<vmem>>, vector<1x96xf32>
    %4 = vector.broadcast %3 : vector<1x96xf32> to vector<128x96xf32>
    %5 = arith.addf %2, %4 : vector<128x96xf32>
    %6 = vector.extract_strided_slice %5 {offsets = [0, 0], sizes = [128, 32], strides = [1, 1]} : vector<128x96xf32> to vector<128x32xf32>
    %7 = arith.truncf %6 : vector<128x32xf32> to vector<128x32xbf16>
    %c0_5 = arith.constant 0 : index
    %c0_6 = arith.constant 0 : index
    %8 = vector.load %arg4[%c0_5, %c0_6] : memref<128x32xbf16, #tpu.memory_space<vmem>>, vector<128x32xbf16>
    tpu.vector_store %arg4[%c0_5, %c0_6], %7 {strides = array<i32>} : memref<128x32xbf16, #tpu.memory_space<vmem>>, vector<128x32xbf16>,
    %9 = vector.extract_strided_slice %5 {offsets = [0, 32], sizes = [128, 64], strides = [1, 1]} : vector<128x96xf32> to vector<128x64xf32>
    %10 = arith.truncf %9 : vector<128x64xf32> to vector<128x64xbf16>
    %c0_7 = arith.constant 0 : index
    %c0_8 = arith.constant 0 : index
    %11 = vector.load %arg5[%c0_7, %c0_8] : memref<128x64xbf16, #tpu.memory_space<vmem>>, vector<128x64xbf16>
    tpu.vector_store %arg5[%c0_7, %c0_8], %10 {strides = array<i32>} : memref<128x64xbf16, #tpu.memory_space<vmem>>, vector<128x64xbf16>,
    return
  }
  func.func @transform_0(%arg0: i32) -> (i32, i32) {
    %c0_i32 = arith.constant 0 : i32
    %c0_i32_0 = arith.constant 0 : i32
    return %arg0, %c0_i32 : i32, i32
  }
  func.func @transform_1(%arg0: i32) -> (i32, i32) {
    %c0_i32 = arith.constant 0 : i32
    %c0_i32_0 = arith.constant 0 : i32
    %c0_i32_1 = arith.constant 0 : i32
    return %c0_i32, %c0_i32_0 : i32, i32
  }
  func.func @transform_2(%arg0: i32) -> (i32, i32) {
    %c0_i32 = arith.constant 0 : i32
    %c0_i32_0 = arith.constant 0 : i32
    %c0_i32_1 = arith.constant 0 : i32
    return %c0_i32, %c0_i32_0 : i32, i32
  }
  func.func @transform_3(%arg0: i32) -> (i32, i32) {
    %c0_i32 = arith.constant 0 : i32
    %c0_i32_0 = arith.constant 0 : i32
    return %arg0, %c0_i32 : i32, i32
  }
  func.func @transform_4(%arg0: i32) -> (i32, i32) {
    %c0_i32 = arith.constant 0 : i32
    %c0_i32_0 = arith.constant 0 : i32
    return %arg0, %c0_i32 : i32, i32
  }
}

module attributes {stable_mosaic.version = 11 : i64} {
  func.func @_attn_ffn_kernel(%arg0: i32, %arg1: i32, %arg2: memref<1x32x32xbf16, #tpu.memory_space<vmem>>, %arg3: memref<1x64x64xbf16, #tpu.memory_space<vmem>>, %arg4: memref<1x32x32xbf16, #tpu.memory_space<vmem>>, %arg5: memref<32x32xbf16, #tpu.memory_space<vmem>>, %arg6: memref<32x128xbf16, #tpu.memory_space<vmem>>, %arg7: memref<128x32xbf16, #tpu.memory_space<vmem>>, %arg8: memref<8x32xf32, #tpu.memory_space<vmem>>, %arg9: memref<1x128xf32, #tpu.memory_space<vmem>>, %arg10: memref<1x32x32xbf16, #tpu.memory_space<vmem>>, %arg11: memref<32x32xf32, #tpu.memory_space<vmem>>) attributes {dimension_semantics = [#tpu.dimension_semantics<parallel>, #tpu.dimension_semantics<parallel>], iteration_bounds = array<i64: 4, 2>, scalar_prefetch = 0 : i64, scratch_operands = 1 : i64, tpu.core_type = #tpu.core_type<tc>, window_params = [{transform_indices = @transform_0, window_bounds = array<i64: 1, 32, 32>}, {transform_indices = @transform_1, window_bounds = array<i64: 1, 64, 64>}, {transform_indices = @transform_2, window_bounds = array<i64: 1, 32, 32>}, {pipeline_mode = #tpu.pipeline_mode<synchronous>, transform_indices = @transform_3, window_bounds = array<i64: 32, 32>}, {pipeline_mode = #tpu.pipeline_mode<synchronous>, transform_indices = @transform_4, window_bounds = array<i64: 32, 128>}, {pipeline_mode = #tpu.pipeline_mode<synchronous>, transform_indices = @transform_5, window_bounds = array<i64: 128, 32>}, {pipeline_mode = #tpu.pipeline_mode<synchronous>, transform_indices = @transform_6, window_bounds = array<i64: 8, 32>}, {pipeline_mode = #tpu.pipeline_mode<synchronous>, transform_indices = @transform_7, window_bounds = array<i64: 1, 128>}, {transform_indices = @transform_8, window_bounds = array<i64: 1, 32, 32>}]} {
    %c0 = arith.constant 0 : index
    %c0_0 = arith.constant 0 : index
    %c0_1 = arith.constant 0 : index
    %0 = vector.load %arg2[%c0, %c0_0, %c0_1] : memref<1x32x32xbf16, #tpu.memory_space<vmem>>, vector<1x32x8xbf16>
    %1 = vector.shape_cast %0 : vector<1x32x8xbf16> to vector<32x8xbf16>
    %2 = arith.extf %1 : vector<32x8xbf16> to vector<32x8xf32>
    %cst = arith.constant 0.353553385 : f32
    %3 = vector.broadcast %cst : f32 to vector<32x8xf32>
    %4 = arith.mulf %2, %3 : vector<32x8xf32>
    %c0_2 = arith.constant 0 : index
    %c0_3 = arith.constant 0 : index
    %c0_4 = arith.constant 0 : index
    %5 = vector.load %arg3[%c0_2, %c0_3, %c0_4] : memref<1x64x64xbf16, #tpu.memory_space<vmem>>, vector<1x64x8xbf16>
    %6 = vector.shape_cast %5 : vector<1x64x8xbf16> to vector<64x8xbf16>
    %c0_5 = arith.constant 0 : index
    %c0_6 = arith.constant 0 : index
    %c32 = arith.constant 32 : index
    %7 = vector.load %arg3[%c0_5, %c0_6, %c32] : memref<1x64x64xbf16, #tpu.memory_space<vmem>>, vector<1x64x8xbf16>
    %8 = vector.shape_cast %7 : vector<1x64x8xbf16> to vector<64x8xbf16>
    %9 = arith.truncf %4 : vector<32x8xf32> to vector<32x8xbf16>
    %cst_7 = arith.constant dense<0.000000e+00> : vector<32x64xf32>
    %10 = tpu.matmul %9, %6, %cst_7 {dimension_numbers = #tpu.dot_dimension_numbers<[1], [1], [0], [0], [0, 0, 1, 0], [], []>} : vector<32x8xbf16>, vector<64x8xbf16>, vector<32x64xf32> -> vector<32x64xf32>
    %cst_8 = arith.constant dense<0xFF800000> : vector<32xf32>
    %11 = vector.multi_reduction <maximumf>, %10, %cst_8 [1] : vector<32x64xf32> to vector<32xf32>
    %12 = vector.shape_cast %11 : vector<32xf32> to vector<32x1xf32>
    %13 = vector.broadcast %12 : vector<32x1xf32> to vector<32x64xf32>
    %14 = arith.subf %10, %13 : vector<32x64xf32>
    %15 = math.exp %14 : vector<32x64xf32>
    %cst_9 = arith.constant dense<0.000000e+00> : vector<32xf32>
    %16 = vector.multi_reduction <add>, %15, %cst_9 [1] : vector<32x64xf32> to vector<32xf32>
    %17 = vector.shape_cast %16 : vector<32xf32> to vector<32x1xf32>
    %18 = tpu.reciprocal %17 : vector<32x1xf32> -> vector<32x1xf32>
    %19 = vector.broadcast %18 : vector<32x1xf32> to vector<32x64xf32>
    %20 = arith.mulf %15, %19 : vector<32x64xf32>
    %21 = arith.truncf %20 : vector<32x64xf32> to vector<32x64xbf16>
    %cst_10 = arith.constant dense<0.000000e+00> : vector<32x8xf32>
    %22 = tpu.matmul %21, %8, %cst_10 {dimension_numbers = #tpu.dot_dimension_numbers<[1], [0], [0], [1], [0, 0, 1, 1], [], []>} : vector<32x64xbf16>, vector<64x8xbf16>, vector<32x8xf32> -> vector<32x8xf32>
    %c0_11 = arith.constant 0 : index
    %c0_12 = arith.constant 0 : index
    %23 = vector.load %arg11[%c0_11, %c0_12] : memref<32x32xf32, #tpu.memory_space<vmem>>, vector<32x8xf32>
    tpu.vector_store %arg11[%c0_11, %c0_12], %22 {strides = array<i32>} : memref<32x32xf32, #tpu.memory_space<vmem>>, vector<32x8xf32>,
    %c0_13 = arith.constant 0 : index
    %c0_14 = arith.constant 0 : index
    %c8 = arith.constant 8 : index
    %24 = vector.load %arg2[%c0_13, %c0_14, %c8] : memref<1x32x32xbf16, #tpu.memory_space<vmem>>, vector<1x32x8xbf16>
    %25 = vector.shape_cast %24 : vector<1x32x8xbf16> to vector<32x8xbf16>
    %26 = arith.extf %25 : vector<32x8xbf16> to vector<32x8xf32>
    %cst_15 = arith.constant 0.353553385 : f32
    %27 = vector.broadcast %cst_15 : f32 to vector<32x8xf32>
    %28 = arith.mulf %26, %27 : vector<32x8xf32>
    %c0_16 = arith.constant 0 : index
    %c0_17 = arith.constant 0 : index
    %c8_18 = arith.constant 8 : index
    %29 = vector.load %arg3[%c0_16, %c0_17, %c8_18] : memref<1x64x64xbf16, #tpu.memory_space<vmem>>, vector<1x64x8xbf16>
    %30 = vector.shape_cast %29 : vector<1x64x8xbf16> to vector<64x8xbf16>
    %c0_19 = arith.constant 0 : index
    %c0_20 = arith.constant 0 : index
    %c40 = arith.constant 40 : index
    %31 = vector.load %arg3[%c0_19, %c0_20, %c40] : memref<1x64x64xbf16, #tpu.memory_space<vmem>>, vector<1x64x8xbf16>
    %32 = vector.shape_cast %31 : vector<1x64x8xbf16> to vector<64x8xbf16>
    %33 = arith.truncf %28 : vector<32x8xf32> to vector<32x8xbf16>
    %cst_21 = arith.constant dense<0.000000e+00> : vector<32x64xf32>
    %34 = tpu.matmul %33, %30, %cst_21 {dimension_numbers = #tpu.dot_dimension_numbers<[1], [1], [0], [0], [0, 0, 1, 0], [], []>} : vector<32x8xbf16>, vector<64x8xbf16>, vector<32x64xf32> -> vector<32x64xf32>
    %cst_22 = arith.constant dense<0xFF800000> : vector<32xf32>
    %35 = vector.multi_reduction <maximumf>, %34, %cst_22 [1] : vector<32x64xf32> to vector<32xf32>
    %36 = vector.shape_cast %35 : vector<32xf32> to vector<32x1xf32>
    %37 = vector.broadcast %36 : vector<32x1xf32> to vector<32x64xf32>
    %38 = arith.subf %34, %37 : vector<32x64xf32>
    %39 = math.exp %38 : vector<32x64xf32>
    %cst_23 = arith.constant dense<0.000000e+00> : vector<32xf32>
    %40 = vector.multi_reduction <add>, %39, %cst_23 [1] : vector<32x64xf32> to vector<32xf32>
    %41 = vector.shape_cast %40 : vector<32xf32> to vector<32x1xf32>
    %42 = tpu.reciprocal %41 : vector<32x1xf32> -> vector<32x1xf32>
    %43 = vector.broadcast %42 : vector<32x1xf32> to vector<32x64xf32>
    %44 = arith.mulf %39, %43 : vector<32x64xf32>
    %45 = arith.truncf %44 : vector<32x64xf32> to vector<32x64xbf16>
    %cst_24 = arith.constant dense<0.000000e+00> : vector<32x8xf32>
    %46 = tpu.matmul %45, %32, %cst_24 {dimension_numbers = #tpu.dot_dimension_numbers<[1], [0], [0], [1], [0, 0, 1, 1], [], []>} : vector<32x64xbf16>, vector<64x8xbf16>, vector<32x8xf32> -> vector<32x8xf32>
    %c0_25 = arith.constant 0 : index
    %c8_26 = arith.constant 8 : index
    %47 = vector.load %arg11[%c0_25, %c8_26] : memref<32x32xf32, #tpu.memory_space<vmem>>, vector<32x8xf32>
    tpu.vector_store %arg11[%c0_25, %c8_26], %46 {strides = array<i32>} : memref<32x32xf32, #tpu.memory_space<vmem>>, vector<32x8xf32>,
    %c0_27 = arith.constant 0 : index
    %c0_28 = arith.constant 0 : index
    %c16 = arith.constant 16 : index
    %48 = vector.load %arg2[%c0_27, %c0_28, %c16] : memref<1x32x32xbf16, #tpu.memory_space<vmem>>, vector<1x32x8xbf16>
    %49 = vector.shape_cast %48 : vector<1x32x8xbf16> to vector<32x8xbf16>
    %50 = arith.extf %49 : vector<32x8xbf16> to vector<32x8xf32>
    %cst_29 = arith.constant 0.353553385 : f32
    %51 = vector.broadcast %cst_29 : f32 to vector<32x8xf32>
    %52 = arith.mulf %50, %51 : vector<32x8xf32>
    %c0_30 = arith.constant 0 : index
    %c0_31 = arith.constant 0 : index
    %c16_32 = arith.constant 16 : index
    %53 = vector.load %arg3[%c0_30, %c0_31, %c16_32] : memref<1x64x64xbf16, #tpu.memory_space<vmem>>, vector<1x64x8xbf16>
    %54 = vector.shape_cast %53 : vector<1x64x8xbf16> to vector<64x8xbf16>
    %c0_33 = arith.constant 0 : index
    %c0_34 = arith.constant 0 : index
    %c48 = arith.constant 48 : index
    %55 = vector.load %arg3[%c0_33, %c0_34, %c48] : memref<1x64x64xbf16, #tpu.memory_space<vmem>>, vector<1x64x8xbf16>
    %56 = vector.shape_cast %55 : vector<1x64x8xbf16> to vector<64x8xbf16>
    %57 = arith.truncf %52 : vector<32x8xf32> to vector<32x8xbf16>
    %cst_35 = arith.constant dense<0.000000e+00> : vector<32x64xf32>
    %58 = tpu.matmul %57, %54, %cst_35 {dimension_numbers = #tpu.dot_dimension_numbers<[1], [1], [0], [0], [0, 0, 1, 0], [], []>} : vector<32x8xbf16>, vector<64x8xbf16>, vector<32x64xf32> -> vector<32x64xf32>
    %cst_36 = arith.constant dense<0xFF800000> : vector<32xf32>
    %59 = vector.multi_reduction <maximumf>, %58, %cst_36 [1] : vector<32x64xf32> to vector<32xf32>
    %60 = vector.shape_cast %59 : vector<32xf32> to vector<32x1xf32>
    %61 = vector.broadcast %60 : vector<32x1xf32> to vector<32x64xf32>
    %62 = arith.subf %58, %61 : vector<32x64xf32>
    %63 = math.exp %62 : vector<32x64xf32>
    %cst_37 = arith.constant dense<0.000000e+00> : vector<32xf32>
    %64 = vector.multi_reduction <add>, %63, %cst_37 [1] : vector<32x64xf32> to vector<32xf32>
    %65 = vector.shape_cast %64 : vector<32xf32> to vector<32x1xf32>
    %66 = tpu.reciprocal %65 : vector<32x1xf32> -> vector<32x1xf32>
    %67 = vector.broadcast %66 : vector<32x1xf32> to vector<32x64xf32>
    %68 = arith.mulf %63, %67 : vector<32x64xf32>
    %69 = arith.truncf %68 : vector<32x64xf32> to vector<32x64xbf16>
    %cst_38 = arith.constant dense<0.000000e+00> : vector<32x8xf32>
    %70 = tpu.matmul %69, %56, %cst_38 {dimension_numbers = #tpu.dot_dimension_numbers<[1], [0], [0], [1], [0, 0, 1, 1], [], []>} : vector<32x64xbf16>, vector<64x8xbf16>, vector<32x8xf32> -> vector<32x8xf32>
    %c0_39 = arith.constant 0 : index
    %c16_40 = arith.constant 16 : index
    %71 = vector.load %arg11[%c0_39, %c16_40] : memref<32x32xf32, #tpu.memory_space<vmem>>, vector<32x8xf32>
    tpu.vector_store %arg11[%c0_39, %c16_40], %70 {strides = array<i32>} : memref<32x32xf32, #tpu.memory_space<vmem>>, vector<32x8xf32>,
    %c0_41 = arith.constant 0 : index
    %c0_42 = arith.constant 0 : index
    %c24 = arith.constant 24 : index
    %72 = vector.load %arg2[%c0_41, %c0_42, %c24] : memref<1x32x32xbf16, #tpu.memory_space<vmem>>, vector<1x32x8xbf16>
    %73 = vector.shape_cast %72 : vector<1x32x8xbf16> to vector<32x8xbf16>
    %74 = arith.extf %73 : vector<32x8xbf16> to vector<32x8xf32>
    %cst_43 = arith.constant 0.353553385 : f32
    %75 = vector.broadcast %cst_43 : f32 to vector<32x8xf32>
    %76 = arith.mulf %74, %75 : vector<32x8xf32>
    %c0_44 = arith.constant 0 : index
    %c0_45 = arith.constant 0 : index
    %c24_46 = arith.constant 24 : index
    %77 = vector.load %arg3[%c0_44, %c0_45, %c24_46] : memref<1x64x64xbf16, #tpu.memory_space<vmem>>, vector<1x64x8xbf16>
    %78 = vector.shape_cast %77 : vector<1x64x8xbf16> to vector<64x8xbf16>
    %c0_47 = arith.constant 0 : index
    %c0_48 = arith.constant 0 : index
    %c56 = arith.constant 56 : index
    %79 = vector.load %arg3[%c0_47, %c0_48, %c56] : memref<1x64x64xbf16, #tpu.memory_space<vmem>>, vector<1x64x8xbf16>
    %80 = vector.shape_cast %79 : vector<1x64x8xbf16> to vector<64x8xbf16>
    %81 = arith.truncf %76 : vector<32x8xf32> to vector<32x8xbf16>
    %cst_49 = arith.constant dense<0.000000e+00> : vector<32x64xf32>
    %82 = tpu.matmul %81, %78, %cst_49 {dimension_numbers = #tpu.dot_dimension_numbers<[1], [1], [0], [0], [0, 0, 1, 0], [], []>} : vector<32x8xbf16>, vector<64x8xbf16>, vector<32x64xf32> -> vector<32x64xf32>
    %cst_50 = arith.constant dense<0xFF800000> : vector<32xf32>
    %83 = vector.multi_reduction <maximumf>, %82, %cst_50 [1] : vector<32x64xf32> to vector<32xf32>
    %84 = vector.shape_cast %83 : vector<32xf32> to vector<32x1xf32>
    %85 = vector.broadcast %84 : vector<32x1xf32> to vector<32x64xf32>
    %86 = arith.subf %82, %85 : vector<32x64xf32>
    %87 = math.exp %86 : vector<32x64xf32>
    %cst_51 = arith.constant dense<0.000000e+00> : vector<32xf32>
    %88 = vector.multi_reduction <add>, %87, %cst_51 [1] : vector<32x64xf32> to vector<32xf32>
    %89 = vector.shape_cast %88 : vector<32xf32> to vector<32x1xf32>
    %90 = tpu.reciprocal %89 : vector<32x1xf32> -> vector<32x1xf32>
    %91 = vector.broadcast %90 : vector<32x1xf32> to vector<32x64xf32>
    %92 = arith.mulf %87, %91 : vector<32x64xf32>
    %93 = arith.truncf %92 : vector<32x64xf32> to vector<32x64xbf16>
    %cst_52 = arith.constant dense<0.000000e+00> : vector<32x8xf32>
    %94 = tpu.matmul %93, %80, %cst_52 {dimension_numbers = #tpu.dot_dimension_numbers<[1], [0], [0], [1], [0, 0, 1, 1], [], []>} : vector<32x64xbf16>, vector<64x8xbf16>, vector<32x8xf32> -> vector<32x8xf32>
    %c0_53 = arith.constant 0 : index
    %c24_54 = arith.constant 24 : index
    %95 = vector.load %arg11[%c0_53, %c24_54] : memref<32x32xf32, #tpu.memory_space<vmem>>, vector<32x8xf32>
    tpu.vector_store %arg11[%c0_53, %c24_54], %94 {strides = array<i32>} : memref<32x32xf32, #tpu.memory_space<vmem>>, vector<32x8xf32>,
    %c0_55 = arith.constant 0 : index
    %c0_56 = arith.constant 0 : index
    %96 = vector.load %arg11[%c0_55, %c0_56] : memref<32x32xf32, #tpu.memory_space<vmem>>, vector<32x32xf32>
    %c0_57 = arith.constant 0 : index
    %c0_58 = arith.constant 0 : index
    %97 = vector.load %arg8[%c0_57, %c0_58] : memref<8x32xf32, #tpu.memory_space<vmem>>, vector<1x32xf32>
    %c1 = arith.constant 1 : index
    %c0_59 = arith.constant 0 : index
    %98 = vector.load %arg8[%c1, %c0_59] : memref<8x32xf32, #tpu.memory_space<vmem>>, vector<1x32xf32>
    %c2 = arith.constant 2 : index
    %c0_60 = arith.constant 0 : index
    %99 = vector.load %arg8[%c2, %c0_60] : memref<8x32xf32, #tpu.memory_space<vmem>>, vector<1x32xf32>
    %c3 = arith.constant 3 : index
    %c0_61 = arith.constant 0 : index
    %100 = vector.load %arg8[%c3, %c0_61] : memref<8x32xf32, #tpu.memory_space<vmem>>, vector<1x32xf32>
    %c4 = arith.constant 4 : index
    %c0_62 = arith.constant 0 : index
    %101 = vector.load %arg8[%c4, %c0_62] : memref<8x32xf32, #tpu.memory_space<vmem>>, vector<1x32xf32>
    %c5 = arith.constant 5 : index
    %c0_63 = arith.constant 0 : index
    %102 = vector.load %arg8[%c5, %c0_63] : memref<8x32xf32, #tpu.memory_space<vmem>>, vector<1x32xf32>
    %103 = arith.truncf %96 : vector<32x32xf32> to vector<32x32xbf16>
    %c0_64 = arith.constant 0 : index
    %c0_65 = arith.constant 0 : index
    %104 = vector.load %arg5[%c0_64, %c0_65] : memref<32x32xbf16, #tpu.memory_space<vmem>>, vector<32x32xbf16>
    %cst_66 = arith.constant dense<0.000000e+00> : vector<32x32xf32>
    %105 = tpu.matmul %103, %104, %cst_66 {dimension_numbers = #tpu.dot_dimension_numbers<[1], [0], [0], [1], [0, 0, 1, 1], [], []>} : vector<32x32xbf16>, vector<32x32xbf16>, vector<32x32xf32> -> vector<32x32xf32>
    %106 = vector.broadcast %97 : vector<1x32xf32> to vector<32x32xf32>
    %107 = arith.addf %105, %106 : vector<32x32xf32>
    %c0_67 = arith.constant 0 : index
    %c0_68 = arith.constant 0 : index
    %c0_69 = arith.constant 0 : index
    %108 = vector.load %arg4[%c0_67, %c0_68, %c0_69] : memref<1x32x32xbf16, #tpu.memory_space<vmem>>, vector<1x32x32xbf16>
    %109 = vector.shape_cast %108 : vector<1x32x32xbf16> to vector<32x32xbf16>
    %110 = arith.extf %109 : vector<32x32xbf16> to vector<32x32xf32>
    %111 = arith.addf %107, %110 : vector<32x32xf32>
    %cst_70 = arith.constant dense<0.000000e+00> : vector<32xf32>
    %112 = vector.multi_reduction <add>, %111, %cst_70 [1] : vector<32x32xf32> to vector<32xf32>
    %113 = vector.shape_cast %112 : vector<32xf32> to vector<32x1xf32>
    %cst_71 = arith.constant 3.200000e+01 : f32
    %114 = vector.broadcast %cst_71 : f32 to vector<32x1xf32>
    %115 = arith.divf %113, %114 : vector<32x1xf32>
    %116 = vector.broadcast %115 : vector<32x1xf32> to vector<32x32xf32>
    %117 = arith.subf %111, %116 : vector<32x32xf32>
    %118 = arith.mulf %117, %117 : vector<32x32xf32>
    %cst_72 = arith.constant dense<0.000000e+00> : vector<32xf32>
    %119 = vector.multi_reduction <add>, %118, %cst_72 [1] : vector<32x32xf32> to vector<32xf32>
    %120 = vector.shape_cast %119 : vector<32xf32> to vector<32x1xf32>
    %cst_73 = arith.constant 3.200000e+01 : f32
    %121 = vector.broadcast %cst_73 : f32 to vector<32x1xf32>
    %122 = arith.divf %120, %121 : vector<32x1xf32>
    %123 = vector.broadcast %115 : vector<32x1xf32> to vector<32x32xf32>
    %124 = arith.subf %111, %123 : vector<32x32xf32>
    %cst_74 = arith.constant 9.99999974E-6 : f32
    %125 = vector.broadcast %cst_74 : f32 to vector<32x1xf32>
    %126 = arith.addf %122, %125 : vector<32x1xf32>
    %127 = math.rsqrt %126 : vector<32x1xf32>
    %128 = vector.broadcast %127 : vector<32x1xf32> to vector<32x32xf32>
    %129 = arith.mulf %124, %128 : vector<32x32xf32>
    %130 = vector.broadcast %98 : vector<1x32xf32> to vector<32x32xf32>
    %131 = arith.mulf %129, %130 : vector<32x32xf32>
    %132 = vector.broadcast %99 : vector<1x32xf32> to vector<32x32xf32>
    %133 = arith.addf %131, %132 : vector<32x32xf32>
    %134 = arith.truncf %133 : vector<32x32xf32> to vector<32x32xbf16>
    %c0_75 = arith.constant 0 : index
    %c0_76 = arith.constant 0 : index
    %135 = vector.load %arg6[%c0_75, %c0_76] : memref<32x128xbf16, #tpu.memory_space<vmem>>, vector<32x128xbf16>
    %cst_77 = arith.constant dense<0.000000e+00> : vector<32x128xf32>
    %136 = tpu.matmul %134, %135, %cst_77 {dimension_numbers = #tpu.dot_dimension_numbers<[1], [0], [0], [1], [0, 0, 1, 1], [], []>} : vector<32x32xbf16>, vector<32x128xbf16>, vector<32x128xf32> -> vector<32x128xf32>
    %c0_78 = arith.constant 0 : index
    %c0_79 = arith.constant 0 : index
    %137 = vector.load %arg9[%c0_78, %c0_79] : memref<1x128xf32, #tpu.memory_space<vmem>>, vector<1x128xf32>
    %138 = vector.broadcast %137 : vector<1x128xf32> to vector<32x128xf32>
    %139 = arith.addf %136, %138 : vector<32x128xf32>
    %cst_80 = arith.constant 0.000000e+00 : f32
    %140 = vector.broadcast %cst_80 : f32 to vector<32x128xf32>
    %141 = arith.maximumf %139, %140 : vector<32x128xf32>
    %142 = arith.truncf %141 : vector<32x128xf32> to vector<32x128xbf16>
    %c0_81 = arith.constant 0 : index
    %c0_82 = arith.constant 0 : index
    %143 = vector.load %arg7[%c0_81, %c0_82] : memref<128x32xbf16, #tpu.memory_space<vmem>>, vector<128x32xbf16>
    %cst_83 = arith.constant dense<0.000000e+00> : vector<32x32xf32>
    %144 = tpu.matmul %142, %143, %cst_83 {dimension_numbers = #tpu.dot_dimension_numbers<[1], [0], [0], [1], [0, 0, 1, 1], [], []>} : vector<32x128xbf16>, vector<128x32xbf16>, vector<32x32xf32> -> vector<32x32xf32>
    %145 = vector.broadcast %100 : vector<1x32xf32> to vector<32x32xf32>
    %146 = arith.addf %144, %145 : vector<32x32xf32>
    %147 = arith.addf %146, %133 : vector<32x32xf32>
    %cst_84 = arith.constant dense<0.000000e+00> : vector<32xf32>
    %148 = vector.multi_reduction <add>, %147, %cst_84 [1] : vector<32x32xf32> to vector<32xf32>
    %149 = vector.shape_cast %148 : vector<32xf32> to vector<32x1xf32>
    %cst_85 = arith.constant 3.200000e+01 : f32
    %150 = vector.broadcast %cst_85 : f32 to vector<32x1xf32>
    %151 = arith.divf %149, %150 : vector<32x1xf32>
    %152 = vector.broadcast %151 : vector<32x1xf32> to vector<32x32xf32>
    %153 = arith.subf %147, %152 : vector<32x32xf32>
    %154 = arith.mulf %153, %153 : vector<32x32xf32>
    %cst_86 = arith.constant dense<0.000000e+00> : vector<32xf32>
    %155 = vector.multi_reduction <add>, %154, %cst_86 [1] : vector<32x32xf32> to vector<32xf32>
    %156 = vector.shape_cast %155 : vector<32xf32> to vector<32x1xf32>
    %cst_87 = arith.constant 3.200000e+01 : f32
    %157 = vector.broadcast %cst_87 : f32 to vector<32x1xf32>
    %158 = arith.divf %156, %157 : vector<32x1xf32>
    %159 = vector.broadcast %151 : vector<32x1xf32> to vector<32x32xf32>
    %160 = arith.subf %147, %159 : vector<32x32xf32>
    %cst_88 = arith.constant 9.99999974E-6 : f32
    %161 = vector.broadcast %cst_88 : f32 to vector<32x1xf32>
    %162 = arith.addf %158, %161 : vector<32x1xf32>
    %163 = math.rsqrt %162 : vector<32x1xf32>
    %164 = vector.broadcast %163 : vector<32x1xf32> to vector<32x32xf32>
    %165 = arith.mulf %160, %164 : vector<32x32xf32>
    %166 = vector.broadcast %101 : vector<1x32xf32> to vector<32x32xf32>
    %167 = arith.mulf %165, %166 : vector<32x32xf32>
    %168 = vector.broadcast %102 : vector<1x32xf32> to vector<32x32xf32>
    %169 = arith.addf %167, %168 : vector<32x32xf32>
    %170 = arith.truncf %169 : vector<32x32xf32> to vector<32x32xbf16>
    %c0_89 = arith.constant 0 : index
    %c0_90 = arith.constant 0 : index
    %c0_91 = arith.constant 0 : index
    %171 = vector.load %arg10[%c0_89, %c0_90, %c0_91] : memref<1x32x32xbf16, #tpu.memory_space<vmem>>, vector<1x32x32xbf16>
    %172 = vector.shape_cast %171 : vector<1x32x32xbf16> to vector<32x32xbf16>
    %173 = vector.shape_cast %170 : vector<32x32xbf16> to vector<1x32x32xbf16>
    tpu.vector_store %arg10[%c0_89, %c0_90, %c0_91], %173 {strides = array<i32>} : memref<1x32x32xbf16, #tpu.memory_space<vmem>>, vector<1x32x32xbf16>,
    return
  }
  func.func @transform_0(%arg0: i32, %arg1: i32) -> (i32, i32, i32) {
    %c0_i32 = arith.constant 0 : i32
    %c0_i32_0 = arith.constant 0 : i32
    return %arg0, %arg1, %c0_i32 : i32, i32, i32
  }
  func.func @transform_1(%arg0: i32, %arg1: i32) -> (i32, i32, i32) {
    %c2_i32 = arith.constant 2 : i32
    %0 = arith.addi %arg0, %c2_i32 : i32
    %c4_i32 = arith.constant 4 : i32
    %c0_i32 = arith.constant 0 : i32
    %1 = arith.cmpi eq, %c4_i32, %c0_i32 : i32
    %c1_i32 = arith.constant 1 : i32
    %2 = arith.select %1, %c1_i32, %c4_i32 : i32
    %3 = arith.remsi %0, %2 : i32
    %c0_i32_0 = arith.constant 0 : i32
    %4 = arith.cmpi ne, %3, %c0_i32_0 : i32
    %c0_i32_1 = arith.constant 0 : i32
    %5 = arith.cmpi slt, %3, %c0_i32_1 : i32
    %c0_i32_2 = arith.constant 0 : i32
    %6 = arith.cmpi slt, %2, %c0_i32_2 : i32
    %7 = arith.xori %5, %6 : i1
    %8 = arith.andi %7, %4 : i1
    %9 = arith.addi %3, %2 : i32
    %10 = arith.select %8, %9, %3 : i32
    %c0_i32_3 = arith.constant 0 : i32
    %c0_i32_4 = arith.constant 0 : i32
    %c0_i32_5 = arith.constant 0 : i32
    return %10, %c0_i32_3, %c0_i32_4 : i32, i32, i32
  }
  func.func @transform_2(%arg0: i32, %arg1: i32) -> (i32, i32, i32) {
    %c0_i32 = arith.constant 0 : i32
    %c0_i32_0 = arith.constant 0 : i32
    return %arg0, %arg1, %c0_i32 : i32, i32, i32
  }
  func.func @transform_3(%arg0: i32, %arg1: i32) -> (i32, i32) {
    %c0_i32 = arith.constant 0 : i32
    %c0_i32_0 = arith.constant 0 : i32
    %c0_i32_1 = arith.constant 0 : i32
    return %c0_i32, %c0_i32_0 : i32, i32
  }
  func.func @transform_4(%arg0: i32, %arg1: i32) -> (i32, i32) {
    %c0_i32 = arith.constant 0 : i32
    %c0_i32_0 = arith.constant 0 : i32
    %c0_i32_1 = arith.constant 0 : i32
    return %c0_i32, %c0_i32_0 : i32, i32
  }
  func.func @transform_5(%arg0: i32, %arg1: i32) -> (i32, i32) {
    %c0_i32 = arith.constant 0 : i32
    %c0_i32_0 = arith.constant 0 : i32
    %c0_i32_1 = arith.constant 0 : i32
    return %c0_i32, %c0_i32_0 : i32, i32
  }
  func.func @transform_6(%arg0: i32, %arg1: i32) -> (i32, i32) {
    %c0_i32 = arith.constant 0 : i32
    %c0_i32_0 = arith.constant 0 : i32
    %c0_i32_1 = arith.constant 0 : i32
    return %c0_i32, %c0_i32_0 : i32, i32
  }
  func.func @transform_7(%arg0: i32, %arg1: i32) -> (i32, i32) {
    %c0_i32 = arith.constant 0 : i32
    %c0_i32_0 = arith.constant 0 : i32
    %c0_i32_1 = arith.constant 0 : i32
    return %c0_i32, %c0_i32_0 : i32, i32
  }
  func.func @transform_8(%arg0: i32, %arg1: i32) -> (i32, i32, i32) {
    %c0_i32 = arith.constant 0 : i32
    %c0_i32_0 = arith.constant 0 : i32
    return %arg0, %arg1, %c0_i32 : i32, i32, i32
  }
}

</mosaic_0001>

<bundles_post_ra>
// kernel: mccformer_encoder_d_forward.5
= control target key start
LH: loop header
LB: loop body
LE: loop exit
PB: predicated region body
PF: predicated region fallthrough
CT: control target
= control target key end

     0   :  { %s619_s12 = smov 0   ;;  %s621_s13 = smov 0   ;;  %s700_s0 = inlined_call_operand.vmem [shape: f32[4,64,4], index: 0, kind: input, shape index: {}]   ;;  %s701_s1 = inlined_call_operand.vmem [shape: f32[4,32], index: 1, kind: input, shape index: {}]   ;;  %s702_s2 = inlined_call_operand.vmem [shape: f32[64,32], index: 2, kind: input, shape index: {}]   ;;  %s703_s3 = inlined_call_operand.vmem [shape: bf16[4,64,32], index: 3, kind: output, shape index: {}]  }
   0x1   :  { %s623_s14 = smov 0   ;;  %s625_s15 = smov 0  }
   0x2   :  { %s627_s16 = smov 0  }
   0x3 LB: > { %s22_s17 = sadd.s32 1, %s585_s14  ;;  %s25_s18 = sadd.s32 1, %s589_s15  ;;  %s593_s16 = sphi %s627_s16, %s13_s16   ;;  %s589_s15 = sphi %s625_s15, %s707_s15   ;;  %s585_s14 = sphi %s623_s14, %s706_s14   ;;  %s581_s13 = sphi %s621_s13, %s705_s13   ;;  %s577_s12 = sphi %s619_s12, %s704_s12  }
   0x4   : > { %p23_p0 = scmp.ge.s32.totalorder %s22_s17, 4  ;;  %p484_p1 = scmp.ge.s32.totalorder %s593_s16, 1 }
   0x5   : > { %p169_p2 = scmp.lt.s32.totalorder %s593_s16, 9 }
   0x6   : > { %s709_s17 = smov (%p23_p0, %s22_s17), 0  ;;  %s711_s18 = smov (!%p23_p0, %s25_s18), %s589_s15 }
   0x7   : > { %p170_p3 = pnand %p484_p1, %p169_p2  ;;  %p27_p4 = scmp.ge.s32.totalorder %s711_s18, 2 }
   0x8   : > { %s485_s19 = sshll.u32 (!%p170_p3), %s581_s13, 2  ;;  %p207_p5 = scmp.lt.s32.totalorder (!%p170_p3), %s577_s12, 3  ;;  %v595_v0 = vmov (!%p170_p3), 0   ;;  %v596_v5 = vmov (!%p170_p3), 1   ;;  %v597_v6 = vmov (!%p170_p3), 2   ;;  %v598_v7 = vmov (!%p170_p3), 3  }
   0x9   : > { %s713_s18 = smov (%p27_p4, %s711_s18), 0  ;;  %173 = sbr.rel (%p170_p3) target bundleno = 192 (0xc0), region = 32 }
   0xa   : > { %548 = vset.pattern.permute.xlu1 (!%p170_p3), %v595_v0  ;;  %547 = vset.pattern.permute.xlu0 (!%p170_p3), %v595_v0  ;;  %p209_p6 = scmp.lt.s32.totalorder (!%p170_p3), %s485_s19, 7  ;;  %v261_v8 = vlaneseq (!%p170_p3)  ;;  %v236_v15 = vld [vmem:[%s701_s1] sm:$0xf] (!%p170_p3)  ;;  %vm373_vm0 = vcmask (!%p170_p3), 257024  }
   0xc   : > { %v262_v11 = vshrl.u32 (!%p170_p3), %v261_v8, 7 }
   0xe   : > { %v263_v14 = vsub.s32 (!%p170_p3), 0, %v262_v11  ;;  %v291_v18 = vsub.s32 (!%p170_p3), 1, %v262_v11  ;;  %v319_v20 = vsub.s32 (!%p170_p3), 2, %v262_v11  ;;  %v347_v27 = vsub.s32 (!%p170_p3), 3, %v262_v11 }
  0x10   : > { %s715_s12 = smov (!%p207_p5, %s577_s12), 3  ;;  %s717_s19 = smov (!%p209_p6, %s485_s19), 7  ;;  %v264_v19 = vrot.slane %v236_v15, %v263_v14  ;;  %v292_v24 = vrot.slane %v236_v15, %v291_v18  ;;  %v320_v26 = vrot.slane %v236_v15, %v319_v20  ;;  %v348_v33 = vrot.slane %v236_v15, %v347_v27 }
  0x11   : > { %s486_s20 = sshll.u32 %s715_s12, 3  ;;  %s489_s28 = sshll.u32 %s717_s19, 3 }
  0x12   : > { %s652_s21 = sadd.s32 %s486_s20, %s717_s19  ;;  %s665_s4 = scalar_lea.vmem %s702_s2, %s489_s28 }
  0x13   : > { %s487_s22 = sshll.u32 %s652_s21, 3  ;;  %v237_v25 = vld [vmem:[%s665_s4] sm:$0xff]  ;;  %v240_v35 = vld [vmem:[%s665_s4 + $0x18] sm:$0xff]  ;;  %v238_v39 = vld [vmem:[%s665_s4 + $0x8] sm:$0xff]  ;;  %s492_s5 = sshll.u32 %s652_s21, 2 }
  0x14   : > { %s214_s25 = scalar_lea.vmem %s700_s0, %s487_s22  ;;  %s674_s8 = scalar_lea.vmem %s703_s3, %s492_s5  ;;  %v239_v56 = vld [vmem:[%s665_s4 + $0x10] sm:$0xff] }
  0x15   : > { %v234_v1 = vld [vmem:[%s214_s25 + $0x10] sm:$0xff]  ;;  %v232_v2 = vld [vmem:[%s214_s25] sm:$0xff]  ;;  %v235_v3 = vld [vmem:[%s214_s25 + $0x18] sm:$0xff] }
  0x16   : > { %253 = vperm.xlu1 %548, %v234_v1   ;;  %243 = vperm.xlu0 %547, %v232_v2   ;;  %v233_v4 = vld [vmem:[%s214_s25 + $0x8] sm:$0xff] }
  0x1a   : > { %258 = vperm.xlu1 %548, %v235_v3   ;;  %248 = vperm.xlu0 %547, %v233_v4  }
  0x1e   : > { %550 = vset.pattern.permute.xlu1 %v596_v5  ;;  %549 = vset.pattern.permute.xlu0 %v596_v5 }
  0x1f   : > { %278 = vperm.xlu1 %550, %v233_v4   ;;  %274 = vperm.xlu0 %549, %v232_v2  }
  0x23   : > { %282 = vperm.xlu1 %550, %v234_v1   ;;  %286 = vperm.xlu0 %549, %v235_v3  }
  0x27   : > { %551 = vset.pattern.permute.xlu1 %v597_v6  ;;  %552 = vset.pattern.permute.xlu0 %v597_v6 }
  0x28   : > { %302 = vperm.xlu1 %551, %v232_v2   ;;  %306 = vperm.xlu0 %552, %v233_v4  }
  0x2c   : > { %310 = vperm.xlu1 %551, %v234_v1   ;;  %553 = vset.pattern.permute.xlu0 %v598_v7 }
  0x2d   : > { %330 = vperm.xlu0 %553, %v232_v2  }
  0x30   : > { %314 = vperm.xlu1 %551, %v235_v3  }
  0x31   : > { %342 = vperm.xlu0 %553, %v235_v3  }
  0x34   : > { %554 = vset.pattern.permute.xlu1 %v598_v7 }
  0x35   : > { %334 = vperm.xlu1 %554, %v233_v4  }
  0x39   : > { %338 = vperm.xlu1 %554, %v234_v1  }
  0x95   : > { %v254_v9 = vpop.permute.xlu1 %253  ;;  %v244_v10 = vpop.permute.xlu0 %243 }
  0x96   : > { %v265_v23 = vmul.f32 %v264_v19, %v244_v10  ;;  %v267_v52 = vmul.f32 %v264_v19, %v254_v9 }
  0x98   : > { %v269_v28 = vadd.f32 %v265_v23, %v237_v25  ;;  %v271_v62 = vadd.f32 %v267_v52, %v239_v56 }
  0x99   : > { %v259_v12 = vpop.permute.xlu1 %258  ;;  %v249_v13 = vpop.permute.xlu0 %248 }
  0x9a   : > { %v268_v34 = vmul.f32 %v264_v19, %v259_v12  ;;  %v266_v36 = vmul.f32 %v264_v19, %v249_v13 }
  0x9c   : > { %v272_v44 = vadd.f32 %v268_v34, %v240_v35  ;;  %v270_v45 = vadd.f32 %v266_v36, %v238_v39 }
  0x9e   : > { %v279_v16 = vpop.permute.xlu1 %278  ;;  %v275_v17 = vpop.permute.xlu0 %274 }
  0x9f   : > { %v293_v29 = vmul.f32 %v292_v24, %v275_v17  ;;  %v294_v46 = vmul.f32 %v292_v24, %v279_v16 }
  0xa1   : > { %v297_v37 = vadd.f32 %v293_v29, %v269_v28  ;;  %v298_v58 = vadd.f32 %v294_v46, %v270_v45 }
  0xa2   : > { %v283_v21 = vpop.permute.xlu1 %282  ;;  %v287_v22 = vpop.permute.xlu0 %286 }
  0xa3   : > { %v296_v40 = vmul.f32 %v292_v24, %v287_v22  ;;  %v295_v59 = vmul.f32 %v292_v24, %v283_v21 }
  0xa5   : > { %v300_v49 = vadd.f32 %v296_v40, %v272_v44  ;;  %v299_v3 = vadd.f32 %v295_v59, %v271_v62 }
  0xa7   : > { %v303_v30 = vpop.permute.xlu1 %302  ;;  %v307_v31 = vpop.permute.xlu0 %306 }
  0xa8   : > { %v321_v32 = vmul.f32 %v320_v26, %v303_v30  ;;  %v322_v53 = vmul.f32 %v320_v26, %v307_v31 }
  0xaa   : > { %v325_v42 = vadd.f32 %v321_v32, %v297_v37  ;;  %v326_v63 = vadd.f32 %v322_v53, %v298_v58 }
  0xab   : > { %v311_v38 = vpop.permute.xlu1 %310 }
  0xac   : > { %v331_v41 = vpop.permute.xlu0 %330  ;;  %v323_v0 = vmul.f32 %v320_v26, %v311_v38 }
  0xad   : > { %v349_v43 = vmul.f32 %v348_v33, %v331_v41 }
  0xae   : > { %v327_v6 = vadd.f32 %v323_v0, %v299_v3 }
  0xaf   : > { %v353_v47 = vadd.f32 %v349_v43, %v325_v42  ;;  %v315_v48 = vpop.permute.xlu1 %314 }
  0xb0   : > { %v324_v50 = vmul.f32 %v320_v26, %v315_v48  ;;  %v343_v51 = vpop.permute.xlu0 %342 }
  0xb1   : > { %v499_v54 = vpack.c.bf16 %v353_v47, %v353_v47  ;;  %v352_v55 = vmul.f32 %v348_v33, %v343_v51 }
  0xb2   : > { %v328_v57 = vadd.f32 %v324_v50, %v300_v49 }
  0xb3   : > { %374 = vst.msk [vmem:[%s674_s8] sm:$0xf] %vm373_vm0, %v499_v54 }
  0xb4   : > { %v356_v60 = vadd.f32 %v352_v55, %v328_v57  ;;  %v335_v61 = vpop.permute.xlu1 %334 }
  0xb5   : > { %v350_v1 = vmul.f32 %v348_v33, %v335_v61 }
  0xb6   : > { %v502_v2 = vpack.c.bf16 %v356_v60, %v356_v60 }
  0xb7   : > { %v354_v4 = vadd.f32 %v350_v1, %v326_v63 }
  0xb8   : > { %377 = vst.msk [vmem:[%s674_s8 + $0xc] sm:$0xf] %vm373_vm0, %v502_v2  ;;  %v339_v5 = vpop.permute.xlu1 %338 }
  0xb9   : > { %v500_v7 = vpack.c.bf16 %v354_v4, %v354_v4  ;;  %v351_v8 = vmul.f32 %v348_v33, %v339_v5 }
  0xbb   : > { %375 = vst.msk [vmem:[%s674_s8 + $0x4] sm:$0xf] %vm373_vm0, %v500_v7  ;;  %v355_v9 = vadd.f32 %v351_v8, %v327_v6 }
  0xbd   : > { %v501_v10 = vpack.c.bf16 %v355_v9, %v355_v9 }
  0xbf   : > { %376 = vst.msk [vmem:[%s674_s8 + $0x8] sm:$0xf] %vm373_vm0, %v501_v10 }
  0xc0 PF: > { %s13_s16 = sadd.s32 1, %s593_s16   ;;  %s704_s12 = smov %s585_s14 }
  0xc1   : > { %p10_p7 = scmp.ge.s32.totalorder %s13_s16, 10   ;;  %s705_s13 = smov %s589_s15 }
  0xc2   : > { %s706_s14 = smov %s709_s17  ;;  %s707_s15 = smov %s713_s18 }
  0xc3   :  { %12 = sbr.rel (!%p10_p7) target bundleno = 3 (0x3), region = 65 }

// kernel: mccformer_encoder_d_forward.6
= control target key start
LH: loop header
LB: loop body
LE: loop exit
PB: predicated region body
PF: predicated region fallthrough
CT: control target
= control target key end

     0   :  { %s804_s15 = smov 0   ;;  %s930_s0 = inlined_call_operand.vmem [shape: bf16[256,32], index: 0, kind: input, shape index: {}]   ;;  %s931_s1 = inlined_call_operand.vmem [shape: bf16[32,96], index: 1, kind: input, shape index: {}]   ;;  %s932_s2 = inlined_call_operand.vmem [shape: f32[1,96], index: 2, kind: input, shape index: {}]   ;;  %s933_s3 = inlined_call_operand.vmem [shape: bf16[256,32], index: 3, kind: output, shape index: {0}]   ;;  %s934_s4 = inlined_call_operand.vmem [shape: bf16[256,64], index: 4, kind: output, shape index: {1}]  }
   0x1 LB: > { %s653_s16 = sadd.s32 4294967295, %s776_s15   ;;  %p657_p0 = scmp.ge.s32.totalorder %s776_s15, 1  ;;  %s776_s15 = sphi %s804_s15, %s15_s15  }
   0x2   : > { %p166_p1 = scmp.lt.s32.totalorder %s776_s15, 3 }
   0x4   : > { %p167_p2 = pnand %p657_p0, %p166_p1 }
   0x5   : > { %v760_v0 = vld [vmem:[%s931_s1] sm:$0xff] (!%p167_p2)   ;;  %s658_s19 = sshll.u32 (!%p167_p2), %s653_s16, 4  ;;  %v761_v1 = vld [vmem:[%s931_s1 + $0x8] sm:$0xff] (!%p167_p2)   ;;  %vm295_vm0 = vcmask (!%p167_p2), 261120   ;;  %vm481_vm1 = vcmask (!%p167_p2), 257024   ;;  %s778_s5 = smov (!%p167_p2), 96  }
   0x6   : > { %170 = sbr.rel (%p167_p2) target bundleno = 379 (0x17b), region = 32  ;;  %p198_p3 = scmp.lt.s32.totalorder (!%p167_p2), %s658_s19, 31  ;;  %727 = vmatprep.subr.bf16.mxu0 (!%p167_p2), %v760_v0  ;;  %747 = vmatprep.subr.bf16.mxu1 (!%p167_p2), %v760_v0  ;;  %v664_v10 = vld [vmem:[%s932_s2] ss:$0 sm:$0xff] (!%p167_p2)  ;;  %vm546_vm2 = vcmask (!%p167_p2), 519168  }
   0x7   : > { %728 = vmatpush3.bf16.msra.mxu0 (!%p167_p2), %v760_v0  ;;  %749 = vmatpush3.bf16.msra.mxu1 (!%p167_p2), %v760_v0 }
   0x8   : > { %729 = vmatprep.subr.bf16.mxu0 (!%p167_p2), %v761_v1  ;;  %748 = vmatprep.subr.bf16.mxu1 (!%p167_p2), %v761_v1 }
   0xb   : > { %730 = vmatpush3.bf16.msra.mxu0 (!%p167_p2), %v761_v1  ;;  %750 = vmatpush3.bf16.msra.mxu1 (!%p167_p2), %v761_v1 }
   0xd   : > { %s936_s19 = smov (!%p198_p3, %s658_s19), 31 }
   0xe   : > { %s818_s22 = sshll.u32 %s936_s19, 2 }
   0xf   : > { %s201_s25 = scalar_lea.vmem %s930_s0, %s818_s22  ;;  %s839_s30 = scalar_lea.vmem %s933_s3, %s818_s22 }
  0x10   : > { %v762_v2 = vld [vmem:[%s201_s25] sm:$0xff]   ;;  %v764_v4 = vld [vmem:[%s201_s25 + $0x8] sm:$0xff]   ;;  %v766_v6 = vld [vmem:[%s201_s25 + $0x10] sm:$0xff]   ;;  %s893_s8 = scalar_lea.vmem %s934_s4, %s818_s22 }
  0x11   : > { %v763_v3 = vld [vmem:[%s201_s25 + $0x20] sm:$0xff]   ;;  %731 = vmatprep.mubr.msk.bf16.mxu0 %vm295_vm0, %v762_v2  ;;  %v765_v5 = vld [vmem:[%s201_s25 + $0x28] sm:$0xff]   ;;  %v768_v7 = vld [vmem:[%s201_s25 + $0x30] sm:$0xff]  }
  0x12   : > { %739 = vmatprep.mubr.msk.bf16.mxu1 %vm295_vm0, %v763_v3  ;;  %732 = vmatmul.mubr.msk.bf16.vlgmr.msra.gmra.mrb[0].mxu0 %vm295_vm0, %v764_v4  ;;  %v767_v8 = vld [vmem:[%s201_s25 + $0x18] sm:$0xff]  }
  0x13   : > { %740 = vmatmul.mubr.msk.bf16.vlgmr.msra.gmra.mrb[0].mxu1 %vm295_vm0, %v765_v5  ;;  %735 = vmatprep.mubr.msk.bf16.mxu0 %vm295_vm0, %v766_v6  ;;  %v769_v9 = vld [vmem:[%s201_s25 + $0x38] sm:$0xff]  }
  0x14   : > { %743 = vmatprep.mubr.msk.bf16.mxu1 %vm295_vm0, %v768_v7 }
  0x1a   : > { %736 = vmatmul.mubr.msk.bf16.gmra.mrb[4].mxu0 %vm295_vm0, %v767_v8 }
  0x1b   : > { %744 = vmatmul.mubr.msk.bf16.gmra.mrb[4].mxu1 %vm295_vm0, %v769_v9 }
  0xe5   : > { %v733_v11 = vpop.f32.mrb[0].mxu0 }
  0xe6   : > { %v363_v12 = vadd.f32 %v733_v11, %v664_v10  ;;  %v741_v13 = vpop.f32.mrb[0].mxu1  ;;  %v354_v14 = vpop.f32.mrb[1].mxu0 }
  0xe7   : > { %v395_v15 = vadd.f32 %v741_v13, %v664_v10  ;;  %v355_v16 = vadd.f32 %v664_v10, %v354_v14  ;;  %v386_v17 = vpop.f32.mrb[1].mxu1  ;;  %v734_v18 = vpop.f32.mrb[2].mxu0 }
  0xe8   : > { %v703_v19 = vpack.c.bf16 %v363_v12, %v363_v12  ;;  %v387_v20 = vadd.f32 %v664_v10, %v386_v17  ;;  %v366_v21 = vadd.f32 %v734_v18, %v664_v10  ;;  %v742_v22 = vpop.f32.mrb[2].mxu1  ;;  %v357_v23 = vpop.f32.mrb[3].mxu0 }
  0xe9   : > { %v711_v24 = vpack.c.bf16 %v395_v15, %v395_v15  ;;  %v701_v25 = vpack.c.bf16 %v355_v16, %v355_v16  ;;  %v398_v26 = vadd.f32 %v742_v22, %v664_v10  ;;  %v358_v27 = vadd.f32 %v664_v10, %v357_v23  ;;  %v389_v28 = vpop.f32.mrb[3].mxu1 }
  0xea   : > { %484 = vst.msk [vmem:[%s839_s30 + $0x8] sm:$0xf] %vm481_vm1, %v703_v19  ;;  %v709_v29 = vpack.c.bf16 %v387_v20, %v387_v20  ;;  %v704_v30 = vpack.c.bf16 %v366_v21, %v366_v21  ;;  %v390_v31 = vadd.f32 %v664_v10, %v389_v28  ;;  %502 = vrot.lane.b32.xlu1 %v703_v19, %s778_s5 }
  0xeb   : > { %492 = vst.msk [vmem:[%s839_s30 + $0x28] sm:$0xf] %vm481_vm1, %v711_v24  ;;  %482 = vst.msk [vmem:[%s839_s30] sm:$0xf] %vm481_vm1, %v701_v25  ;;  %v712_v32 = vpack.c.bf16 %v398_v26, %v398_v26  ;;  %v702_v33 = vpack.c.bf16 %v358_v27, %v358_v27  ;;  %518 = vrot.lane.b32.xlu0 %v711_v24, %s778_s5 }
  0xec   : > { %490 = vst.msk [vmem:[%s839_s30 + $0x20] sm:$0xf] %vm481_vm1, %v709_v29  ;;  %485 = vst.msk [vmem:[%s839_s30 + $0xc] sm:$0xf] %vm481_vm1, %v704_v30  ;;  %v710_v34 = vpack.c.bf16 %v390_v31, %v390_v31 }
  0xed   : > { %493 = vst.msk [vmem:[%s839_s30 + $0x2c] sm:$0xf] %vm481_vm1, %v712_v32  ;;  %483 = vst.msk [vmem:[%s839_s30 + $0x4] sm:$0xf] %vm481_vm1, %v702_v33  ;;  %v737_v35 = vpop.f32.mrb[4].mxu0 }
  0xee   : > { %491 = vst.msk [vmem:[%s839_s30 + $0x24] sm:$0xf] %vm481_vm1, %v710_v34  ;;  %504 = vrot.lane.b32.xlu1 %v704_v30, %s778_s5  ;;  %v379_v36 = vadd.f32 %v737_v35, %v664_v10  ;;  %v370_v37 = vpop.f32.mrb[5].mxu0  ;;  %v745_v38 = vpop.f32.mrb[4].mxu1 }
  0xef   : > { %498 = vrot.lane.b32.xlu0 %v701_v25, %s778_s5  ;;  %v371_v39 = vadd.f32 %v664_v10, %v370_v37  ;;  %v738_v40 = vpop.f32.mrb[6].mxu0  ;;  %v411_v41 = vadd.f32 %v745_v38, %v664_v10  ;;  %v402_v42 = vpop.f32.mrb[5].mxu1 }
  0xf0   : > { %v707_v43 = vpack.c.bf16 %v379_v36, %v379_v36  ;;  %v382_v44 = vadd.f32 %v738_v40, %v664_v10  ;;  %v373_v45 = vpop.f32.mrb[7].mxu0  ;;  %v403_v46 = vadd.f32 %v664_v10, %v402_v42  ;;  %v746_v47 = vpop.f32.mrb[6].mxu1 }
  0xf1   : > { %v705_v48 = vpack.c.bf16 %v371_v39, %v371_v39  ;;  %v374_v49 = vadd.f32 %v664_v10, %v373_v45  ;;  %v715_v50 = vpack.c.bf16 %v411_v41, %v411_v41  ;;  %v414_v51 = vadd.f32 %v746_v47, %v664_v10  ;;  %v405_v52 = vpop.f32.mrb[7].mxu1 }
  0xf2   : > { %488 = vst.msk [vmem:[%s839_s30 + $0x18] sm:$0xf] %vm481_vm1, %v707_v43  ;;  %520 = vrot.lane.b32.xlu1 %v712_v32, %s778_s5  ;;  %v708_v53 = vpack.c.bf16 %v382_v44, %v382_v44  ;;  %v713_v54 = vpack.c.bf16 %v403_v46, %v403_v46  ;;  %v406_v55 = vadd.f32 %v664_v10, %v405_v52 }
  0xf3   : > { %486 = vst.msk [vmem:[%s839_s30 + $0x10] sm:$0xf] %vm481_vm1, %v705_v48  ;;  %514 = vrot.lane.b32.xlu0 %v709_v29, %s778_s5  ;;  %v706_v56 = vpack.c.bf16 %v374_v49, %v374_v49  ;;  %496 = vst.msk [vmem:[%s839_s30 + $0x38] sm:$0xf] %vm481_vm1, %v715_v50  ;;  %v716_v57 = vpack.c.bf16 %v414_v51, %v414_v51 }
  0xf4   : > { %489 = vst.msk [vmem:[%s839_s30 + $0x1c] sm:$0xf] %vm481_vm1, %v708_v53  ;;  %494 = vst.msk [vmem:[%s839_s30 + $0x30] sm:$0xf] %vm481_vm1, %v713_v54  ;;  %v714_v58 = vpack.c.bf16 %v406_v55, %v406_v55 }
  0xf5   : > { %487 = vst.msk [vmem:[%s839_s30 + $0x14] sm:$0xf] %vm481_vm1, %v706_v56  ;;  %497 = vst.msk [vmem:[%s839_s30 + $0x3c] sm:$0xf] %vm481_vm1, %v716_v57 }
  0xf6   : > { %516 = vrot.lane.b32.xlu1 %v710_v34, %s778_s5  ;;  %495 = vst.msk [vmem:[%s839_s30 + $0x34] sm:$0xf] %vm481_vm1, %v714_v58 }
  0xf7   : > { %500 = vrot.lane.b32.xlu0 %v702_v33, %s778_s5 }
  0xfa   : > { %512 = vrot.lane.b32.xlu1 %v708_v53, %s778_s5 }
  0xfb   : > { %510 = vrot.lane.b32.xlu0 %v707_v43, %s778_s5 }
  0xfe   : > { %508 = vrot.lane.b32.xlu1 %v706_v56, %s778_s5 }
  0xff   : > { %506 = vrot.lane.b32.xlu0 %v705_v48, %s778_s5 }
 0x102   : > { %524 = vrot.lane.b32.xlu1 %v714_v58, %s778_s5 }
 0x103   : > { %522 = vrot.lane.b32.xlu0 %v713_v54, %s778_s5 }
 0x106   : > { %528 = vrot.lane.b32.xlu1 %v716_v57, %s778_s5 }
 0x107   : > { %526 = vrot.lane.b32.xlu0 %v715_v50, %s778_s5 }
 0x15c   : > { %v503_v59 = vpop.permute.xlu1 %502 }
 0x15d   : > { %v519_v60 = vpop.permute.xlu0 %518  ;;  %549 = vst.msk [vmem:[%s893_s8 + $0x8] sm:$0xf] %vm546_vm2, %v503_v59 }
 0x15e   : > { %557 = vst.msk [vmem:[%s893_s8 + $0x28] sm:$0xf] %vm546_vm2, %v519_v60 }
 0x160   : > { %v505_v61 = vpop.permute.xlu1 %504 }
 0x161   : > { %550 = vst.msk [vmem:[%s893_s8 + $0xc] sm:$0xf] %vm546_vm2, %v505_v61  ;;  %v499_v62 = vpop.permute.xlu0 %498 }
 0x162   : > { %547 = vst.msk [vmem:[%s893_s8] sm:$0xf] %vm546_vm2, %v499_v62 }
 0x164   : > { %v521_v63 = vpop.permute.xlu1 %520 }
 0x165   : > { %558 = vst.msk [vmem:[%s893_s8 + $0x2c] sm:$0xf] %vm546_vm2, %v521_v63  ;;  %v515_v0 = vpop.permute.xlu0 %514 }
 0x166   : > { %555 = vst.msk [vmem:[%s893_s8 + $0x20] sm:$0xf] %vm546_vm2, %v515_v0 }
 0x168   : > { %v517_v1 = vpop.permute.xlu1 %516 }
 0x169   : > { %556 = vst.msk [vmem:[%s893_s8 + $0x24] sm:$0xf] %vm546_vm2, %v517_v1  ;;  %v501_v2 = vpop.permute.xlu0 %500 }
 0x16a   : > { %548 = vst.msk [vmem:[%s893_s8 + $0x4] sm:$0xf] %vm546_vm2, %v501_v2 }
 0x16c   : > { %v513_v3 = vpop.permute.xlu1 %512 }
 0x16d   : > { %554 = vst.msk [vmem:[%s893_s8 + $0x1c] sm:$0xf] %vm546_vm2, %v513_v3  ;;  %v511_v4 = vpop.permute.xlu0 %510 }
 0x16e   : > { %553 = vst.msk [vmem:[%s893_s8 + $0x18] sm:$0xf] %vm546_vm2, %v511_v4 }
 0x170   : > { %v509_v5 = vpop.permute.xlu1 %508 }
 0x171   : > { %552 = vst.msk [vmem:[%s893_s8 + $0x14] sm:$0xf] %vm546_vm2, %v509_v5  ;;  %v507_v6 = vpop.permute.xlu0 %506 }
 0x172   : > { %551 = vst.msk [vmem:[%s893_s8 + $0x10] sm:$0xf] %vm546_vm2, %v507_v6 }
 0x174   : > { %v525_v7 = vpop.permute.xlu1 %524 }
 0x175   : > { %560 = vst.msk [vmem:[%s893_s8 + $0x34] sm:$0xf] %vm546_vm2, %v525_v7  ;;  %v523_v8 = vpop.permute.xlu0 %522 }
 0x176   : > { %559 = vst.msk [vmem:[%s893_s8 + $0x30] sm:$0xf] %vm546_vm2, %v523_v8 }
 0x178   : > { %v529_v9 = vpop.permute.xlu1 %528 }
 0x179   : > { %562 = vst.msk [vmem:[%s893_s8 + $0x3c] sm:$0xf] %vm546_vm2, %v529_v9  ;;  %v527_v10 = vpop.permute.xlu0 %526 }
 0x17a   : > { %561 = vst.msk [vmem:[%s893_s8 + $0x38] sm:$0xf] %vm546_vm2, %v527_v10 }
 0x17b PF: > { %s15_s15 = sadd.s32 1, %s776_s15  }
 0x17c   : > { %p12_p4 = scmp.ge.s32.totalorder %s15_s15, 4  }
 0x17e   :  { %14 = sbr.rel (!%p12_p4) target bundleno = 1 (0x1), region = 74 }

// kernel: mccformer_encoder_d_forward.7
= control target key start
LH: loop header
LB: loop body
LE: loop exit
PB: predicated region body
PF: predicated region fallthrough
CT: control target
= control target key end

     0   :  { %s2680_s27 = smov 0   ;;  %s2682_s28 = smov 0   ;;  %s3047_s0 = inlined_call_operand.vmem [shape: bf16[4,64,32], index: 0, kind: input, shape index: {}]   ;;  %s3048_s1 = inlined_call_operand.vmem [shape: bf16[4,64,64], index: 1, kind: input, shape index: {}]   ;;  %s3049_s2 = inlined_call_operand.vmem [shape: bf16[4,64,32], index: 2, kind: input, shape index: {}]   ;;  %s3050_s3 = inlined_call_operand.vmem [shape: bf16[32,32], index: 3, kind: input, shape index: {}]   ;;  %s3051_s4 = inlined_call_operand.vmem [shape: bf16[32,128], index: 4, kind: input, shape index: {}]   ;;  %s3052_s5 = inlined_call_operand.vmem [shape: bf16[128,32], index: 5, kind: input, shape index: {}]   ;;  %s3053_s6 = inlined_call_operand.vmem [shape: f32[8,32], index: 6, kind: input, shape index: {}]   ;;  %s3054_s7 = inlined_call_operand.vmem [shape: f32[1,128], index: 7, kind: input, shape index: {}]   ;;  %s3055_s8 = inlined_call_operand.vmem [shape: bf16[4,64,32], index: 8, kind: output, shape index: {}]  }
   0x1   :  { %s2684_s29 = smov 0   ;;  %s2686_s30 = smov 0  }
   0x2   :  { %s2688_s9 = smov 0  }
   0x3 LB: > { %s27_s10 = sadd.s32 1, %s2615_s29  ;;  %s30_s11 = sadd.s32 1, %s2619_s30  ;;  %s2623_s9 = sphi %s2688_s9, %s18_s9   ;;  %s2619_s30 = sphi %s2686_s30, %s3059_s30   ;;  %s2615_s29 = sphi %s2684_s29, %s3058_s29   ;;  %s2611_s28 = sphi %s2682_s28, %s3057_s28   ;;  %s2607_s27 = sphi %s2680_s27, %s3056_s27  }
   0x4   : > { %p28_p0 = scmp.ge.s32.totalorder %s27_s10, 2  ;;  %p2087_p1 = scmp.ge.s32.totalorder %s2623_s9, 1 }
   0x5   : > { %p362_p2 = scmp.lt.s32.totalorder %s2623_s9, 9 }
   0x6   : > { %s3061_s10 = smov (%p28_p0, %s27_s10), 0  ;;  %s3063_s11 = smov (!%p28_p0, %s30_s11), %s2619_s30 }
   0x7   : > { %p363_p3 = pnand %p2087_p1, %p362_p2  ;;  %p32_p4 = scmp.ge.s32.totalorder %s3063_s11, 4 }
   0x8   : > { %s441_s12 = sadd.s32 (!%p363_p3), 2, %s2611_s28  ;;  %s2088_s13 = sshll.u32 (!%p363_p3), %s2607_s27, 2  ;;  %vm535_vm0 = vcmask (!%p363_p3), 64512   ;;  %vm603_vm1 = vcmask (!%p363_p3), 523264   ;;  %vm973_vm2 = vcmask (!%p363_p3), 130112   ;;  %vm1230_vm3 = vcmask (!%p363_p3), 195712  }
   0x9   : > { %s3065_s11 = smov (%p32_p4, %s3063_s11), 0  ;;  %366 = sbr.rel (%p363_p3) target bundleno = 3465 (0xd89), region = 52 }
   0xa   : > { %p442_p5 = scmp.lt.s32.totalorder (!%p363_p3), %s441_s12, 0  ;;  %s443_s14 = ssub.s32 (!%p363_p3), 0, %s441_s12  ;;  %vm1487_vm4 = vcmask (!%p363_p3), 261312   ;;  %vm1524_vm5 = vcmask (!%p363_p3), 261120   ;;  %vm1952_vm6 = vcmask (!%p363_p3), 257024  }
   0xb   : > { %s2091_s15 = smin.u32 (!%p363_p3), %s443_s14, %s441_s12  ;;  %p432_p6 = scmp.lt.s32.totalorder (!%p363_p3), %s2611_s28, 3 }
   0xc   : > { %s445_s16 = sand.u32 (!%p363_p3), 3, %s2091_s15   ;;  %p434_p7 = scmp.lt.s32.totalorder (!%p363_p3), %s2088_s13, 7 }
   0xd   : > { %s446_s17 = ssub.s32 (!%p363_p3), 0, %s445_s16  ;;  %s2627_s14 = smov (!%p363_p3), 112  }
   0xe   : > { %s2628_s15 = smov (!%p363_p3), 88   ;;  %s2634_s26 = smov (!%p363_p3), 24  }
  0x10   : > { %s3067_s17 = smov (!%p442_p5, %s446_s17), %s445_s16  ;;  %s3069_s28 = smov (!%p432_p6, %s2611_s28), 3 }
  0x11   : > { %p2093_p8 = scmp.lt.s32.totalorder %s3067_s17, 0  ;;  %s452_s18 = sadd.s32 4, %s3067_s17 }
  0x12   : > { %s3071_s13 = smov (!%p434_p7, %s2088_s13), 7  ;;  %s2089_s19 = sshll.u32 %s3069_s28, 3 }
  0x13   : > { %s3073_s18 = smov (!%p2093_p8, %s452_s18), %s3067_s17  ;;  %s437_s20 = sadd.s32 %s2089_s19, %s3071_s13 }
  0x14   : > { %p454_p9 = scmp.lt.s32.totalorder %s3073_s18, 3  ;;  %s2713_s21 = sshll.u32 %s437_s20, 2 }
  0x15   : > { %s439_s24 = scalar_lea.vmem %s3047_s0, %s2713_s21  ;;  %s2625_s28 = smov 96  }
  0x16   : > { %s3075_s18 = smov (!%p454_p9, %s3073_s18), 3  ;;  %v2169_v0 = vld [vmem:[%s439_s24] sm:$0xff]   ;;  %v2208_v13 = vld [vmem:[%s439_s24 + $0x8] sm:$0xff]   ;;  %s2626_s13 = smov 120  }
  0x17   : > { %s2163_s25 = sshll.u32 %s3075_s18, 5  ;;  %v2170_v2 = vunpack.c.l.bf16 %v2169_v0  ;;  %v2171_v3 = vunpack.c.h.bf16 %v2169_v0  ;;  %v2174_v14 = vunpack.c.l.bf16 %v2208_v13  ;;  %v2175_v15 = vunpack.c.h.bf16 %v2208_v13  ;;  %s2629_s16 = smov 80  }
  0x18   : > { %s2722_s12 = scalar_lea.vmem %s3048_s1, %s2163_s25  ;;  %s2630_s17 = smov 104  }
  0x19   : > { %v2477_v1 = vld [vmem:[%s2722_s12] sm:$0xff]   ;;  %v2478_v4 = vld [vmem:[%s2722_s12 + $0x8] sm:$0xff]   ;;  %v501_v6 = vmul.f32 0.35355338, %v2170_v2  ;;  %v502_v7 = vmul.f32 0.35355338, %v2171_v3 }
  0x1a   : > { %2411 = vmatprep.subr.msk.bf16.mxu0 %vm535_vm0, %v2477_v1  ;;  %v543_v5 = vsel %vm535_vm0, %v2477_v1, 0  ;;  %v546_v8 = vsel %vm535_vm0, %v2478_v4, 0  ;;  %v2479_v9 = vld [vmem:[%s2722_s12 + $0x10] sm:$0xff]   ;;  %v2738_v12 = vld [vmem:[%s2722_s12 + $0x18] sm:$0xff]   ;;  %v503_v17 = vmul.f32 0.35355338, %v2174_v14 }
  0x1b   : > { %2280 = vmatpush3.bf16.xpose.msra.mxu0 %v543_v5  ;;  %v2731_v10 = vpack.c.bf16 %v502_v7, %v501_v6  ;;  %v549_v11 = vsel %vm535_vm0, %v2479_v9, 0  ;;  %v552_v16 = vsel %vm535_vm0, %v2738_v12, 0  ;;  %v504_v18 = vmul.f32 0.35355338, %v2175_v15  ;;  %v2763_v51 = vld [vmem:[%s2722_s12] sm:$0xff]   ;;  %v2768_v52 = vld [vmem:[%s2722_s12 + $0x8] sm:$0xff]  }
  0x1c   : > { %2412 = vmatprep.subr.msk.bf16.mxu0 %vm535_vm0, %v2478_v4  ;;  %v2772_v53 = vld [vmem:[%s2722_s12 + $0x10] sm:$0xff]   ;;  %v2776_v54 = vld [vmem:[%s2722_s12] sm:$0xff]   ;;  %v2780_v55 = vld [vmem:[%s2722_s12 + $0x18] sm:$0xff]   ;;  %s2631_s18 = smov 72   ;;  %s2632_s19 = smov 8  }
  0x1d   : > { %2287 = vmatprep.mubr.msk.bf16.mxu0 %vm535_vm0, %v2731_v10  ;;  %v2744_v19 = vpack.c.bf16 %v504_v18, %v503_v17  ;;  %v2784_v56 = vld [vmem:[%s2722_s12 + $0x8] sm:$0xff]   ;;  %v2790_v57 = vld [vmem:[%s2722_s12 + $0x10] sm:$0xff]   ;;  %v2794_v58 = vld [vmem:[%s2722_s12 + $0x18] sm:$0xff]   ;;  %s2633_s20 = smov 16  }
  0x23   : > { %2282 = vmatpush3.bf16.xpose.msra.mxu0 %v546_v8 }
  0x24   : > { %2413 = vmatprep.subr.msk.bf16.mxu0 %vm535_vm0, %v2479_v9 }
  0x2b   : > { %2284 = vmatpush3.bf16.xpose.msra.mxu0 %v549_v11 }
  0x2c   : > { %2414 = vmatprep.subr.msk.bf16.mxu0 %vm535_vm0, %v2738_v12 }
  0x33   : > { %2286 = vmatpush3.bf16.xpose.msra.mxu0 %v552_v16 }
  0x3a   : > { %2288 = vmatmul.mubr.msk.bf16.vlgmr.msra.gmra.mrb[0].mxu0 %vm535_vm0, %v2744_v19 }
 0x10d   : > { %v2289_v20 = vpop.f32.mrb[0].mxu0 }
 0x10e   : > { %v588_v21 = vpop.f32.mrb[1].mxu0  ;;  %v610_v22 = vsel %vm603_vm1, %v2289_v20, -inf }
 0x10f   : > { %611 = vmax.xlane.f32.xlu1 %v610_v22  ;;  %v2290_v23 = vpop.f32.mrb[2].mxu0  ;;  %v604_v24 = vsel %vm603_vm1, %v588_v21, -inf }
 0x110   : > { %605 = vmax.xlane.f32.xlu0 %v604_v24  ;;  %v591_v25 = vpop.f32.mrb[3].mxu0  ;;  %v613_v26 = vsel %vm603_vm1, %v2290_v23, -inf }
 0x111   : > { %v607_v27 = vsel %vm603_vm1, %v591_v25, -inf }
 0x113   : > { %614 = vmax.xlane.f32.xlu1 %v613_v26 }
 0x114   : > { %608 = vmax.xlane.f32.xlu0 %v607_v27 }
 0x124   : > { %652 = vrot.lane.b32.xlu1 %v2478_v4, %s2625_s28 }
 0x128   : > { %654 = vrot.lane.b32.xlu1 %v2479_v9, %s2625_s28 }
 0x12a   : > { %650 = vrot.lane.b32.xlu0 %v2477_v1, %s2625_s28 }
 0x19c   : > { %v612_v28 = vpop.xlane.xlu1 %611 }
 0x19d   : > { %v618_v29 = vsub.f32 %v2289_v20, %v612_v28  ;;  %v606_v30 = vpop.xlane.xlu0 %605 }
 0x19e   : > { %v616_v31 = vsub.f32 %v588_v21, %v606_v30 }
 0x19f   : > { %v624_v32 = vmul.f32 1.442695, %v618_v29 }
 0x1a0   : > { %v620_v33 = vmul.f32 1.442695, %v616_v31  ;;  %v615_v34 = vpop.xlane.xlu1 %614 }
 0x1a1   : > { %2505 = vpow2.f32 %v624_v32  ;;  %v619_v35 = vsub.f32 %v2290_v23, %v615_v34  ;;  %v609_v36 = vpop.xlane.xlu0 %608 }
 0x1a2   : > { %v617_v37 = vsub.f32 %v591_v25, %v609_v36  ;;  %2507 = vpow2.f32 %v620_v33 }
 0x1a3   : > { %v626_v38 = vmul.f32 1.442695, %v619_v35 }
 0x1a4   : > { %v622_v39 = vmul.f32 1.442695, %v617_v37  ;;  %v653_v40 = vpop.permute.xlu1 %652 }
 0x1a5   : > { %2509 = vpow2.f32 %v626_v38  ;;  %v651_v41 = vpop.permute.xlu0 %650 }
 0x1a6   : > { %2291 = vmatprep.subr.bf16.mxu1 %v651_v41  ;;  %2511 = vpow2.f32 %v622_v39 }
 0x1a7   : > { %2292 = vmatpush3.bf16.msra.mxu1 %v651_v41 }
 0x1a8   : > { %2293 = vmatprep.subr.bf16.mxu1 %v653_v40  ;;  %v655_v42 = vpop.permute.xlu1 %654 }
 0x1ab   : > { %v2755_v43 = vpop.eup %2505  ;;  %2294 = vmatpush3.bf16.msra.mxu1 %v653_v40 }
 0x1ac   : > { %v634_v44 = vsel %vm603_vm1, %v2755_v43, 0.0  ;;  %2295 = vmatprep.subr.bf16.mxu1 %v655_v42  ;;  %v2508_v45 = vpop.eup %2507 }
 0x1ad   : > { %635 = vadd.xlane.f32.xlu0 %v634_v44  ;;  %v628_v48 = vsel %vm603_vm1, %v2508_v45, 0.0 }
 0x1af   : > { %v2510_v46 = vpop.eup %2509  ;;  %2296 = vmatpush3.bf16.msra.mxu1 %v655_v42 }
 0x1b0   : > { %v637_v47 = vsel %vm603_vm1, %v2510_v46, 0.0  ;;  %v2512_v49 = vpop.eup %2511 }
 0x1b1   : > { %638 = vadd.xlane.f32.xlu1 %v637_v47  ;;  %629 = vadd.xlane.f32.xlu0 %v628_v48  ;;  %v631_v50 = vsel %vm603_vm1, %v2512_v49, 0.0 }
 0x1b5   : > { %632 = vadd.xlane.f32.xlu1 %v631_v50 }
 0x1c6   : > { %656 = vrot.lane.b32.xlu1 %v2738_v12, %s2625_s28  ;;  %s480_s28 = scalar_lea.vmem %s3049_s2, %s2713_s21 }
 0x1c7   : > { %769 = vrot.lane.b32.xlu0 %v2763_v51, %s2626_s13 }
 0x1ca   : > { %771 = vrot.lane.b32.xlu1 %v2768_v52, %s2626_s13 }
 0x1cb   : > { %773 = vrot.lane.b32.xlu0 %v2772_v53, %s2626_s13 }
 0x1ce   : > { %1026 = vrot.lane.b32.xlu1 %v2776_v54, %s2627_s14 }
 0x1cf   : > { %775 = vrot.lane.b32.xlu0 %v2780_v55, %s2626_s13 }
 0x1d2   : > { %1028 = vrot.lane.b32.xlu1 %v2784_v56, %s2627_s14 }
 0x1d3   : > { %745 = vrot.lane.b32.xlu0 %v2731_v10, %s2626_s13 }
 0x1d6   : > { %747 = vrot.lane.b32.xlu1 %v2744_v19, %s2626_s13 }
 0x1d7   : > { %1030 = vrot.lane.b32.xlu0 %v2790_v57, %s2627_s14 }
 0x1da   : > { %1032 = vrot.lane.b32.xlu1 %v2794_v58, %s2627_s14 }
 0x1db   : > { %1002 = vrot.lane.b32.xlu0 %v2731_v10, %s2627_s14 }
 0x1de   : > { %1004 = vrot.lane.b32.xlu1 %v2744_v19, %s2627_s14 }
 0x23a   : > { %v636_v59 = vpop.xlane.xlu0 %635 }
 0x23e   : > { %v639_v60 = vpop.xlane.xlu1 %638  ;;  %v630_v61 = vpop.xlane.xlu0 %629 }
 0x23f   : > { %2513 = vrcp.f32 %v639_v60 }
 0x240   : > { %2515 = vrcp.f32 %v630_v61 }
 0x241   : > { %2517 = vrcp.f32 %v636_v59 }
 0x242   : > { %v633_v62 = vpop.xlane.xlu1 %632  ;;  %v770_v63 = vpop.permute.xlu0 %769 }
 0x243   : > { %2519 = vrcp.f32 %v633_v62  ;;  %v784_v17 = vsel %vm535_vm0, %v770_v63, 0 }
 0x246   : > { %v657_v0 = vpop.permute.xlu1 %656  ;;  %v774_v1 = vpop.permute.xlu0 %773 }
 0x247   : > { %2297 = vmatprep.subr.bf16.mxu1 %v657_v0  ;;  %v790_v28 = vsel %vm535_vm0, %v774_v1, 0 }
 0x248   : > { %2298 = vmatpush3.bf16.msra.mxu1 %v657_v0 }
 0x249   : > { %2415 = vmatprep.subr.msk.bf16.mxu1 %vm535_vm0, %v770_v63  ;;  %v2514_v2 = vpop.eup %2513 }
 0x24a   : > { %v772_v3 = vpop.permute.xlu1 %771  ;;  %v776_v4 = vpop.permute.xlu0 %775  ;;  %v647_v8 = vmul.f32 %v2514_v2, %v2510_v46 }
 0x24b   : > { %v2516_v5 = vpop.eup %2515  ;;  %v787_v25 = vsel %vm535_vm0, %v772_v3, 0  ;;  %v793_v30 = vsel %vm535_vm0, %v776_v4, 0 }
 0x24c   : > { %v2518_v6 = vpop.eup %2517  ;;  %v644_v11 = vmul.f32 %v2516_v5, %v2508_v45 }
 0x24d   : > { %v2520_v7 = vpop.eup %2519  ;;  %v646_v15 = vmul.f32 %v2518_v6, %v2755_v43 }
 0x24e   : > { %v1027_v9 = vpop.permute.xlu1 %1026  ;;  %v645_v12 = vmul.f32 %v2520_v7, %v2512_v49  ;;  %v746_v13 = vpop.permute.xlu0 %745 }
 0x24f   : > { %v1041_v14 = vsel %vm535_vm0, %v1027_v9, 0  ;;  %2419 = vmatprep.subr.msk.bf16.mxu0 %vm535_vm0, %v1027_v9  ;;  %v649_v18 = vpack.c.bf16 %v647_v8, %v646_v15 }
 0x250   : > { %2328 = vmatpush3.bf16.xpose.msra.mxu0 %v1041_v14  ;;  %v648_v16 = vpack.c.bf16 %v645_v12, %v644_v11 }
 0x252   : > { %2299 = vmatprep.mubr.msk.bf16.mxu1 %vm603_vm1, %v648_v16  ;;  %v1029_v20 = vpop.permute.xlu1 %1028  ;;  %v1031_v21 = vpop.permute.xlu0 %1030 }
 0x253   : > { %2300 = vmatmul.mubr.msk.bf16.vlgmr.msra.gmra.mrb[0].mxu1 %vm603_vm1, %v649_v18  ;;  %2420 = vmatprep.subr.msk.bf16.mxu0 %vm535_vm0, %v1029_v20  ;;  %v1044_v22 = vsel %vm535_vm0, %v1029_v20, 0  ;;  %v1047_v26 = vsel %vm535_vm0, %v1031_v21, 0 }
 0x254   : > { %2304 = vmatpush3.bf16.xpose.msra.mxu1 %v784_v17  ;;  %2311 = vmatprep.mubr.msk.bf16.mxu1 %vm535_vm0, %v746_v13 }
 0x255   : > { %2416 = vmatprep.subr.msk.bf16.mxu1 %vm535_vm0, %v772_v3 }
 0x256   : > { %v1003_v23 = vpop.permute.xlu0 %1002  ;;  %v748_v24 = vpop.permute.xlu1 %747 }
 0x257   : > { %2335 = vmatprep.mubr.msk.bf16.mxu0 %vm535_vm0, %v1003_v23 }
 0x258   : > { %2330 = vmatpush3.bf16.xpose.msra.mxu0 %v1044_v22 }
 0x259   : > { %2421 = vmatprep.subr.msk.bf16.mxu0 %vm535_vm0, %v1031_v21 }
 0x25a   : > { %v1033_v27 = vpop.permute.xlu1 %1032 }
 0x25b   : > { %v1050_v29 = vsel %vm535_vm0, %v1033_v27, 0 }
 0x25c   : > { %2306 = vmatpush3.bf16.xpose.msra.mxu1 %v787_v25 }
 0x25d   : > { %2417 = vmatprep.subr.msk.bf16.mxu1 %vm535_vm0, %v774_v1 }
 0x25e   : > { %v1005_v31 = vpop.permute.xlu1 %1004 }
 0x260   : > { %2332 = vmatpush3.bf16.xpose.msra.mxu0 %v1047_v26 }
 0x261   : > { %2422 = vmatprep.subr.msk.bf16.mxu0 %vm535_vm0, %v1033_v27 }
 0x264   : > { %2308 = vmatpush3.bf16.xpose.msra.mxu1 %v790_v28 }
 0x265   : > { %2418 = vmatprep.subr.msk.bf16.mxu1 %vm535_vm0, %v776_v4 }
 0x268   : > { %2334 = vmatpush3.bf16.xpose.msra.mxu0 %v1050_v29 }
 0x26c   : > { %2310 = vmatpush3.bf16.xpose.msra.mxu1 %v793_v30 }
 0x26f   : > { %2336 = vmatmul.mubr.msk.bf16.vlgmr.msra.gmra.mrb[4].mxu0 %vm535_vm0, %v1005_v31 }
 0x273   : > { %2312 = vmatmul.mubr.msk.bf16.vlgmr.msra.gmra.mrb[4].mxu1 %vm535_vm0, %v748_v24 }
 0x326   : > { %v2301_v32 = vpop.f32.mrb[0].mxu1 }
 0x327   : > { %719 = vst.msk [vmem:[#allocation2 + $0x10] sm:$0xff] %vm535_vm0, %v2301_v32  ;;  %v702_v33 = vpop.f32.mrb[1].mxu1 }
 0x328   : > { %717 = vst.msk [vmem:[#allocation2] sm:$0xff] %vm535_vm0, %v702_v33  ;;  %v2302_v34 = vpop.f32.mrb[2].mxu1  ;;  %v2871_v33 = vld [vmem:[%s2722_s12] sm:$0xff]  }
 0x329   : > { %720 = vst.msk [vmem:[#allocation2 + $0x18] sm:$0xff] %vm535_vm0, %v2302_v34  ;;  %v705_v35 = vpop.f32.mrb[3].mxu1 }
 0x32a   : > { %718 = vst.msk [vmem:[#allocation2 + $0x8] sm:$0xff] %vm535_vm0, %v705_v35 }
 0x342   : > { %v2337_v36 = vpop.f32.mrb[4].mxu0 }
 0x343   : > { %v1086_v37 = vpop.f32.mrb[5].mxu0  ;;  %v1107_v50 = vsel %vm603_vm1, %v2337_v36, -inf }
 0x344   : > { %v2338_v38 = vpop.f32.mrb[6].mxu0  ;;  %v1101_v49 = vsel %vm603_vm1, %v1086_v37, -inf }
 0x345   : > { %v1089_v39 = vpop.f32.mrb[7].mxu0  ;;  %v1110_v45 = vsel %vm603_vm1, %v2338_v38, -inf }
 0x346   : > { %v2313_v40 = vpop.f32.mrb[4].mxu1  ;;  %v1104_v41 = vsel %vm603_vm1, %v1089_v39, -inf }
 0x347   : > { %v829_v42 = vpop.f32.mrb[5].mxu1  ;;  %v850_v43 = vsel %vm603_vm1, %v2313_v40, -inf  ;;  %1105 = vmax.xlane.f32.xlu1 %v1104_v41 }
 0x348   : > { %851 = vmax.xlane.f32.xlu0 %v850_v43  ;;  %v2829_v44 = vpop.f32.mrb[6].mxu1  ;;  %v844_v47 = vsel %vm603_vm1, %v829_v42, -inf }
 0x349   : > { %v2832_v46 = vpop.f32.mrb[7].mxu1  ;;  %v853_v48 = vsel %vm603_vm1, %v2829_v44, -inf }
 0x34a   : > { %v847_v59 = vsel %vm603_vm1, %v2832_v46, -inf }
 0x34b   : > { %1111 = vmax.xlane.f32.xlu1 %v1110_v45 }
 0x34c   : > { %845 = vmax.xlane.f32.xlu0 %v844_v47 }
 0x350   : > { %854 = vmax.xlane.f32.xlu0 %v853_v48 }
 0x354   : > { %1102 = vmax.xlane.f32.xlu0 %v1101_v49 }
 0x358   : > { %1108 = vmax.xlane.f32.xlu0 %v1107_v50 }
 0x35c   : > { %892 = vrot.lane.b32.xlu1 %v2768_v52, %s2628_s15 }
 0x36e   : > { %890 = vrot.lane.b32.xlu0 %v2763_v51, %s2628_s15 }
 0x380   : > { %848 = vmax.xlane.f32.xlu1 %v847_v59 }
 0x391   : > { %894 = vrot.lane.b32.xlu1 %v2772_v53, %s2628_s15 }
 0x3d4   : > { %v1106_v60 = vpop.xlane.xlu1 %1105 }
 0x3d5   : > { %v1114_v61 = vsub.f32 %v1089_v39, %v1106_v60  ;;  %v852_v62 = vpop.xlane.xlu0 %851  ;;  %v2889_v39 = vld [vmem:[%s2722_s12 + $0x18] sm:$0xff]  }
 0x3d6   : > { %v858_v8 = vsub.f32 %v2313_v40, %v852_v62 }
 0x3d7   : > { %v1119_v63 = vmul.f32 1.442695, %v1114_v61 }
 0x3d8   : > { %v1112_v2 = vpop.xlane.xlu1 %1111  ;;  %v864_v14 = vmul.f32 1.442695, %v858_v8 }
 0x3d9   : > { %2521 = vpow2.f32 %v1119_v63  ;;  %v846_v0 = vpop.xlane.xlu0 %845  ;;  %v1116_v51 = vsub.f32 %v2338_v38, %v1112_v2  ;;  %v2885_v38 = vld [vmem:[%s2722_s12 + $0x8] sm:$0xff]  }
 0x3da   : > { %v856_v15 = vsub.f32 %v829_v42, %v846_v0 }
 0x3db   : > { %v1123_v9 = vmul.f32 1.442695, %v1116_v51 }
 0x3dc   : > { %v893_v13 = vpop.permute.xlu1 %892  ;;  %v860_v17 = vmul.f32 1.442695, %v856_v15 }
 0x3dd   : > { %v855_v1 = vpop.xlane.xlu0 %854 }
 0x3de   : > { %v859_v29 = vsub.f32 %v2829_v44, %v855_v1 }
 0x3e0   : > { %v866_v31 = vmul.f32 1.442695, %v859_v29 }
 0x3e1   : > { %v1103_v3 = vpop.xlane.xlu0 %1102 }
 0x3e2   : > { %v1113_v52 = vsub.f32 %v1086_v37, %v1103_v3 }
 0x3e3   : > { %v2847_v4 = vpop.eup %2521 }
 0x3e4   : > { %v1117_v5 = vmul.f32 1.442695, %v1113_v52  ;;  %v1128_v6 = vsel %vm603_vm1, %v2847_v4, 0.0 }
 0x3e5   : > { %v1109_v7 = vpop.xlane.xlu0 %1108  ;;  %1129 = vadd.xlane.f32.xlu0 %v1128_v6 }
 0x3e6   : > { %2523 = vpow2.f32 %v1117_v5  ;;  %v1115_v53 = vsub.f32 %v2337_v36, %v1109_v7 }
 0x3e8   : > { %v1121_v11 = vmul.f32 1.442695, %v1115_v53 }
 0x3e9   : > { %v891_v12 = vpop.permute.xlu0 %890 }
 0x3ea   : > { %2525 = vpow2.f32 %v1121_v11  ;;  %2315 = vmatprep.subr.bf16.mxu1 %v891_v12 }
 0x3eb   : > { %2316 = vmatpush3.bf16.msra.mxu1 %v891_v12  ;;  %2527 = vpow2.f32 %v1123_v9 }
 0x3ec   : > { %2317 = vmatprep.subr.bf16.mxu1 %v893_v13  ;;  %2529 = vpow2.f32 %v864_v14 }
 0x3ed   : > { %2531 = vpow2.f32 %v860_v17 }
 0x3ee   : > { %2533 = vpow2.f32 %v866_v31 }
 0x3ef   : > { %2318 = vmatpush3.bf16.msra.mxu1 %v893_v13 }
 0x3f0   : > { %v2851_v16 = vpop.eup %2523 }
 0x3f1   : > { %v1125_v18 = vsel %vm603_vm1, %v2851_v16, 0.0 }
 0x3f2   : > { %1126 = vadd.xlane.f32.xlu1 %v1125_v18 }
 0x3f4   : > { %v2526_v20 = vpop.eup %2525 }
 0x3f5   : > { %v1131_v21 = vsel %vm603_vm1, %v2526_v20, 0.0  ;;  %v2528_v22 = vpop.eup %2527 }
 0x3f6   : > { %1132 = vadd.xlane.f32.xlu0 %v1131_v21  ;;  %v1134_v23 = vsel %vm603_vm1, %v2528_v22, 0.0  ;;  %v2857_v24 = vpop.eup %2529 }
 0x3f7   : > { %v874_v25 = vsel %vm603_vm1, %v2857_v24, 0.0  ;;  %v2861_v26 = vpop.eup %2531 }
 0x3f8   : > { %v868_v27 = vsel %vm603_vm1, %v2861_v26, 0.0  ;;  %v2534_v35 = vpop.eup %2533 }
 0x3f9   : > { %v877_v36 = vsel %vm603_vm1, %v2534_v35, 0.0 }
 0x3fa   : > { %1135 = vadd.xlane.f32.xlu0 %v1134_v23 }
 0x3fe   : > { %875 = vadd.xlane.f32.xlu0 %v874_v25 }
 0x402   : > { %869 = vadd.xlane.f32.xlu0 %v868_v27 }
 0x403   : > { %896 = vrot.lane.b32.xlu1 %v2780_v55, %s2628_s15  ;;  %v2875_v55 = vld [vmem:[%s2722_s12 + $0x10] sm:$0xff]  }
 0x40d   : > { %v849_v28 = vpop.xlane.xlu1 %848 }
 0x40e   : > { %v857_v32 = vsub.f32 %v2832_v46, %v849_v28 }
 0x410   : > { %v862_v34 = vmul.f32 1.442695, %v857_v32 }
 0x411   : > { %v895_v30 = vpop.permute.xlu1 %894 }
 0x412   : > { %2319 = vmatprep.subr.bf16.mxu1 %v895_v30  ;;  %2535 = vpow2.f32 %v862_v34 }
 0x413   : > { %2320 = vmatpush3.bf16.msra.mxu1 %v895_v30 }
 0x418   : > { %1147 = vrot.lane.b32.xlu0 %v2776_v54, %s2629_s16 }
 0x41c   : > { %1283 = vrot.lane.b32.xlu0 %v2871_v33, %s2630_s17  ;;  %v2536_v54 = vpop.eup %2535 }
 0x41d   : > { %v871_v37 = vsel %vm603_vm1, %v2536_v54, 0.0 }
 0x420   : > { %1287 = vrot.lane.b32.xlu0 %v2875_v55, %s2630_s17 }
 0x424   : > { %1259 = vrot.lane.b32.xlu0 %v2731_v10, %s2630_s17 }
 0x427   : > { %878 = vadd.xlane.f32.xlu1 %v877_v36 }
 0x42b   : > { %872 = vadd.xlane.f32.xlu1 %v871_v37 }
 0x43c   : > { %1149 = vrot.lane.b32.xlu1 %v2784_v56, %s2629_s16 }
 0x440   : > { %1151 = vrot.lane.b32.xlu1 %v2790_v57, %s2629_s16 }
 0x444   : > { %1153 = vrot.lane.b32.xlu1 %v2794_v58, %s2629_s16 }
 0x448   : > { %1285 = vrot.lane.b32.xlu1 %v2885_v38, %s2630_s17 }
 0x44c   : > { %1289 = vrot.lane.b32.xlu1 %v2889_v39, %s2630_s17 }
 0x450   : > { %1261 = vrot.lane.b32.xlu1 %v2744_v19, %s2630_s17  ;;  %s490_s17 = scalar_lea.vmem %s3055_s8, %s2713_s21 }
 0x472   : > { %v1130_v10 = vpop.xlane.xlu0 %1129 }
 0x47f   : > { %v1127_v40 = vpop.xlane.xlu1 %1126 }
 0x483   : > { %v897_v41 = vpop.permute.xlu1 %896  ;;  %v1133_v42 = vpop.xlane.xlu0 %1132 }
 0x484   : > { %2321 = vmatprep.subr.bf16.mxu1 %v897_v41  ;;  %2537 = vrcp.f32 %v1133_v42 }
 0x485   : > { %2322 = vmatpush3.bf16.msra.mxu1 %v897_v41 }
 0x487   : > { %v1136_v56 = vpop.xlane.xlu0 %1135 }
 0x488   : > { %2539 = vrcp.f32 %v1136_v56 }
 0x489   : > { %2541 = vrcp.f32 %v1130_v10 }
 0x48a   : > { %2543 = vrcp.f32 %v1127_v40 }
 0x48b   : > { %v876_v57 = vpop.xlane.xlu0 %875 }
 0x48e   : > { %v2538_v43 = vpop.eup %2537 }
 0x48f   : > { %v870_v58 = vpop.xlane.xlu0 %869  ;;  %v1143_v45 = vmul.f32 %v2538_v43, %v2526_v20 }
 0x492   : > { %v2540_v44 = vpop.eup %2539 }
 0x493   : > { %v1144_v46 = vmul.f32 %v2540_v44, %v2528_v22  ;;  %v1148_v47 = vpop.permute.xlu0 %1147  ;;  %v2542_v50 = vpop.eup %2541 }
 0x494   : > { %2339 = vmatprep.subr.bf16.mxu1 %v1148_v47  ;;  %v2544_v59 = vpop.eup %2543  ;;  %v1142_v6 = vmul.f32 %v2542_v50, %v2847_v4 }
 0x495   : > { %v1146_v48 = vpack.c.bf16 %v1144_v46, %v1143_v45  ;;  %v1141_v3 = vmul.f32 %v2544_v59, %v2851_v16 }
 0x497   : > { %v1145_v53 = vpack.c.bf16 %v1142_v6, %v1141_v3  ;;  %v1284_v9 = vpop.permute.xlu0 %1283 }
 0x498   : > { %v1298_v13 = vsel %vm535_vm0, %v1284_v9, 0 }
 0x49b   : > { %v1288_v12 = vpop.permute.xlu0 %1287 }
 0x49c   : > { %v1304_v16 = vsel %vm535_vm0, %v1288_v12, 0 }
 0x49f   : > { %v1260_v4 = vpop.permute.xlu0 %1259 }
 0x4b4   : > { %v879_v19 = vpop.xlane.xlu1 %878 }
 0x4b5   : > { %2545 = vrcp.f32 %v879_v19 }
 0x4b6   : > { %2547 = vrcp.f32 %v870_v58 }
 0x4b7   : > { %2549 = vrcp.f32 %v876_v57 }
 0x4b8   : > { %v873_v49 = vpop.xlane.xlu1 %872 }
 0x4b9   : > { %2551 = vrcp.f32 %v873_v49 }
 0x4bc   : > { %v1150_v52 = vpop.permute.xlu1 %1149 }
 0x4bf   : > { %v2546_v60 = vpop.eup %2545 }
 0x4c0   : > { %v2548_v61 = vpop.eup %2547  ;;  %v887_v0 = vmul.f32 %v2546_v60, %v2534_v35  ;;  %v1152_v8 = vpop.permute.xlu1 %1151 }
 0x4c1   : > { %v2550_v62 = vpop.eup %2549  ;;  %v884_v1 = vmul.f32 %v2548_v61, %v2861_v26 }
 0x4c2   : > { %v886_v51 = vmul.f32 %v2550_v62, %v2857_v24 }
 0x4c3   : > { %v2552_v63 = vpop.eup %2551 }
 0x4c4   : > { %v885_v2 = vmul.f32 %v2552_v63, %v2536_v54  ;;  %v889_v7 = vpack.c.bf16 %v887_v0, %v886_v51  ;;  %v1154_v11 = vpop.permute.xlu1 %1153 }
 0x4c6   : > { %v888_v5 = vpack.c.bf16 %v885_v2, %v884_v1 }
 0x4c8   : > { %2323 = vmatprep.mubr.msk.bf16.mxu1 %vm603_vm1, %v888_v5  ;;  %v1286_v14 = vpop.permute.xlu1 %1285 }
 0x4c9   : > { %2324 = vmatmul.mubr.msk.bf16.vlgmr.msra.gmra.mrb[8].mxu1 %vm603_vm1, %v889_v7  ;;  %v1301_v15 = vsel %vm535_vm0, %v1286_v14, 0 }
 0x4ca   : > { %2340 = vmatpush3.bf16.msra.mxu1 %v1148_v47  ;;  %2347 = vmatprep.mubr.msk.bf16.mxu1 %vm603_vm1, %v1145_v53 }
 0x4cb   : > { %2341 = vmatprep.subr.bf16.mxu1 %v1150_v52 }
 0x4cc   : > { %v1290_v17 = vpop.permute.xlu1 %1289 }
 0x4cd   : > { %v1307_v18 = vsel %vm535_vm0, %v1290_v17, 0 }
 0x4ce   : > { %2342 = vmatpush3.bf16.msra.mxu1 %v1150_v52 }
 0x4cf   : > { %2343 = vmatprep.subr.bf16.mxu1 %v1152_v8 }
 0x4d0   : > { %v1262_v20 = vpop.permute.xlu1 %1261 }
 0x4d2   : > { %2344 = vmatpush3.bf16.msra.mxu1 %v1152_v8 }
 0x4d3   : > { %2345 = vmatprep.subr.bf16.mxu1 %v1154_v11 }
 0x4d6   : > { %2346 = vmatpush3.bf16.msra.mxu1 %v1154_v11 }
 0x4d7   : > { %2423 = vmatprep.subr.msk.bf16.mxu1 %vm535_vm0, %v1284_v9 }
 0x4d9   : > { %2348 = vmatmul.mubr.msk.bf16.vlgmr.msra.gmra.mrb[12].mxu1 %vm603_vm1, %v1146_v48 }
 0x4da   : > { %2359 = vmatprep.mubr.msk.bf16.mxu1 %vm535_vm0, %v1260_v4 }
 0x4df   : > { %2352 = vmatpush3.bf16.xpose.msra.mxu1 %v1298_v13 }
 0x4e0   : > { %2424 = vmatprep.subr.msk.bf16.mxu1 %vm535_vm0, %v1286_v14 }
 0x4e7   : > { %2354 = vmatpush3.bf16.xpose.msra.mxu1 %v1301_v15 }
 0x4e8   : > { %2425 = vmatprep.subr.msk.bf16.mxu1 %vm535_vm0, %v1288_v12 }
 0x4ef   : > { %2356 = vmatpush3.bf16.xpose.msra.mxu1 %v1304_v16 }
 0x4f0   : > { %2426 = vmatprep.subr.msk.bf16.mxu1 %vm535_vm0, %v1290_v17 }
 0x4f7   : > { %2358 = vmatpush3.bf16.xpose.msra.mxu1 %v1307_v18  ;;  %v2493_v18 = vld [vmem:[%s3050_s3] sm:$0xff]  }
 0x4fe   : > { %2360 = vmatmul.mubr.msk.bf16.vlgmr.msra.gmra.mrb[16].mxu1 %vm535_vm0, %v1262_v20  ;;  %v2494_v20 = vld [vmem:[%s3050_s3 + $0x8] sm:$0xff]  }
 0x59c   : > { %v2325_v21 = vpop.f32.mrb[8].mxu1 }
 0x59d   : > { %v942_v22 = vpop.f32.mrb[9].mxu1 }
 0x59e   : > { %v2326_v23 = vpop.f32.mrb[10].mxu1 }
 0x59f   : > { %v945_v24 = vpop.f32.mrb[11].mxu1 }
 0x5ac   : > { %v2349_v25 = vpop.f32.mrb[12].mxu1 }
 0x5ad   : > { %v1199_v26 = vpop.f32.mrb[13].mxu1 }
 0x5ae   : > { %v2350_v27 = vpop.f32.mrb[14].mxu1 }
 0x5af   : > { %v1202_v28 = vpop.f32.mrb[15].mxu1 }
 0x5d1   : > { %v2361_v29 = vpop.f32.mrb[16].mxu1 }
 0x5d2   : > { %v1343_v30 = vpop.f32.mrb[17].mxu1  ;;  %v1364_v36 = vsel %vm603_vm1, %v2361_v29, -inf }
 0x5d3   : > { %v2362_v31 = vpop.f32.mrb[18].mxu1  ;;  %v1358_v32 = vsel %vm603_vm1, %v1343_v30, -inf }
 0x5d4   : > { %1359 = vmax.xlane.f32.xlu0 %v1358_v32  ;;  %v1346_v34 = vpop.f32.mrb[19].mxu1  ;;  %v1367_v54 = vsel %vm603_vm1, %v2362_v31, -inf }
 0x5d5   : > { %v1361_v35 = vsel %vm603_vm1, %v1346_v34, -inf }
 0x5d6   : > { %1362 = vmax.xlane.f32.xlu1 %v1361_v35 }
 0x5d8   : > { %1365 = vmax.xlane.f32.xlu0 %v1364_v36  ;;  %v2201_v36 = vld [vmem:[%s480_s28] sm:$0xff]  }
 0x5dc   : > { %1368 = vmax.xlane.f32.xlu0 %v1367_v54  ;;  %v2134_v54 = vld [vmem:[%s3053_s6] ss:$0 sm:$0xff] }
 0x5e7   : > { %1406 = vrot.lane.b32.xlu1 %v2885_v38, %s2631_s18 }
 0x5eb   : > { %1408 = vrot.lane.b32.xlu1 %v2875_v55, %s2631_s18 }
 0x661   : > { %v1360_v37 = vpop.xlane.xlu0 %1359 }
 0x662   : > { %v1370_v10 = vsub.f32 %v1343_v30, %v1360_v37  ;;  %v2212_v37 = vld [vmem:[%s480_s28 + $0x8] sm:$0xff]  }
 0x663   : > { %v1363_v40 = vpop.xlane.xlu1 %1362 }
 0x664   : > { %v1374_v56 = vmul.f32 1.442695, %v1370_v10  ;;  %v1371_v57 = vsub.f32 %v1346_v34, %v1363_v40  ;;  %v2202_v40 = vunpack.c.l.bf16 %v2201_v36 }
 0x665   : > { %v1366_v41 = vpop.xlane.xlu0 %1365 }
 0x666   : > { %v1372_v42 = vsub.f32 %v2361_v29, %v1366_v41  ;;  %v1376_v45 = vmul.f32 1.442695, %v1371_v57 }
 0x667   : > { %v1407_v60 = vpop.permute.xlu1 %1406 }
 0x668   : > { %v1378_v58 = vmul.f32 1.442695, %v1372_v42 }
 0x669   : > { %v1369_v43 = vpop.xlane.xlu0 %1368 }
 0x66a   : > { %2553 = vpow2.f32 %v1378_v58  ;;  %v1373_v44 = vsub.f32 %v2362_v31, %v1369_v43  ;;  %v2203_v58 = vunpack.c.h.bf16 %v2201_v36  ;;  %v2206_v43 = vunpack.c.l.bf16 %v2212_v37  ;;  %v2139_v36 = vld [vmem:[%s3053_s6 + $0x1] ss:$0 sm:$0xff] }
 0x66b   : > { %2555 = vpow2.f32 %v1374_v56  ;;  %v1409_v61 = vpop.permute.xlu1 %1408 }
 0x66c   : > { %v1380_v46 = vmul.f32 1.442695, %v1373_v44 }
 0x66e   : > { %2557 = vpow2.f32 %v1380_v46 }
 0x66f   : > { %2559 = vpow2.f32 %v1376_v45 }
 0x674   : > { %v2554_v38 = vpop.eup %2553 }
 0x675   : > { %v1388_v47 = vsel %vm603_vm1, %v2554_v38, 0.0  ;;  %v2556_v55 = vpop.eup %2555 }
 0x676   : > { %1389 = vadd.xlane.f32.xlu0 %v1388_v47  ;;  %v1382_v19 = vsel %vm603_vm1, %v2556_v55, 0.0 }
 0x678   : > { %v2558_v48 = vpop.eup %2557 }
 0x679   : > { %v1391_v49 = vsel %vm603_vm1, %v2558_v48, 0.0  ;;  %v2560_v50 = vpop.eup %2559 }
 0x67a   : > { %1383 = vadd.xlane.f32.xlu0 %v1382_v19  ;;  %1392 = vadd.xlane.f32.xlu1 %v1391_v49  ;;  %v1385_v59 = vsel %vm603_vm1, %v2560_v50, 0.0 }
 0x67e   : > { %1386 = vadd.xlane.f32.xlu1 %v1385_v59 }
 0x68f   : > { %1410 = vrot.lane.b32.xlu1 %v2889_v39, %s2631_s18 }
 0x690   : > { %1404 = vrot.lane.b32.xlu0 %v2871_v33, %s2631_s18 }
 0x693   : > { %963 = vrot.lane.b32.xlu1 %v945_v24, %s2632_s19 }
 0x694   : > { %961 = vrot.lane.b32.xlu0 %v942_v22, %s2632_s19 }
 0x697   : > { %967 = vrot.lane.b32.xlu1 %v2326_v23, %s2632_s19 }
 0x698   : > { %965 = vrot.lane.b32.xlu0 %v2325_v21, %s2632_s19 }
 0x69b   : > { %1220 = vrot.lane.b32.xlu1 %v1202_v28, %s2633_s20 }
 0x69c   : > { %1218 = vrot.lane.b32.xlu0 %v1199_v26, %s2633_s20 }
 0x69f   : > { %1224 = vrot.lane.b32.xlu1 %v2350_v27, %s2633_s20 }
 0x6a0   : > { %1222 = vrot.lane.b32.xlu0 %v2349_v25, %s2633_s20 }
 0x703   : > { %v1390_v62 = vpop.xlane.xlu0 %1389 }
 0x707   : > { %v1384_v63 = vpop.xlane.xlu0 %1383  ;;  %v1393_v0 = vpop.xlane.xlu1 %1392 }
 0x708   : > { %2561 = vrcp.f32 %v1393_v0 }
 0x709   : > { %2563 = vrcp.f32 %v1384_v63 }
 0x70a   : > { %2565 = vrcp.f32 %v1390_v62 }
 0x70b   : > { %v1405_v39 = vpop.permute.xlu0 %1404  ;;  %v1387_v33 = vpop.xlane.xlu1 %1386 }
 0x70c   : > { %2567 = vrcp.f32 %v1387_v33  ;;  %2363 = vmatprep.subr.bf16.mxu0 %v1405_v39 }
 0x70d   : > { %2364 = vmatpush3.bf16.msra.mxu0 %v1405_v39 }
 0x70e   : > { %2365 = vmatprep.subr.bf16.mxu0 %v1407_v60 }
 0x70f   : > { %v962_v1 = vpop.permute.xlu0 %961  ;;  %v1411_v2 = vpop.permute.xlu1 %1410 }
 0x710   : > { %974 = vst.msk [vmem:[#allocation2] sm:$0xff] %vm973_vm2, %v962_v1 }
 0x711   : > { %2366 = vmatpush3.bf16.msra.mxu0 %v1407_v60 }
 0x712   : > { %2367 = vmatprep.subr.bf16.mxu0 %v1409_v61  ;;  %v2562_v3 = vpop.eup %2561 }
 0x713   : > { %v966_v52 = vpop.permute.xlu0 %965  ;;  %v964_v51 = vpop.permute.xlu1 %963  ;;  %v1401_v53 = vmul.f32 %v2562_v3, %v2558_v48 }
 0x714   : > { %v2564_v5 = vpop.eup %2563  ;;  %976 = vst.msk [vmem:[#allocation2 + $0x10] sm:$0xff] %vm973_vm2, %v966_v52  ;;  %975 = vst.msk [vmem:[#allocation2 + $0x8] sm:$0xff] %vm973_vm2, %v964_v51 }
 0x715   : > { %v2566_v6 = vpop.eup %2565  ;;  %2368 = vmatpush3.bf16.msra.mxu0 %v1409_v61  ;;  %v1398_v11 = vmul.f32 %v2564_v5, %v2556_v55 }
 0x716   : > { %v2568_v7 = vpop.eup %2567  ;;  %2369 = vmatprep.subr.bf16.mxu0 %v1411_v2  ;;  %v1400_v4 = vmul.f32 %v2566_v6, %v2554_v38  ;;  %v2207_v38 = vunpack.c.h.bf16 %v2212_v37 }
 0x717   : > { %v1219_v8 = vpop.permute.xlu0 %1218  ;;  %v968_v9 = vpop.permute.xlu1 %967  ;;  %v1399_v12 = vmul.f32 %v2568_v7, %v2560_v50 }
 0x718   : > { %1231 = vst.msk [vmem:[#allocation2] sm:$0xff] %vm1230_vm3, %v1219_v8  ;;  %v1403_v14 = vpack.c.bf16 %v1401_v53, %v1400_v4 }
 0x719   : > { %977 = vst.msk [vmem:[#allocation2 + $0x18] sm:$0xff] %vm973_vm2, %v968_v9  ;;  %2370 = vmatpush3.bf16.msra.mxu0 %v1411_v2  ;;  %v1402_v13 = vpack.c.bf16 %v1399_v12, %v1398_v11 }
 0x71a   : > { %2375 = vmatprep.subr.bf16.mxu0 %v2493_v18 }
 0x71b   : > { %v1223_v15 = vpop.permute.xlu0 %1222  ;;  %2371 = vmatprep.mubr.msk.bf16.mxu0 %vm603_vm1, %v1402_v13  ;;  %v1221_v16 = vpop.permute.xlu1 %1220  ;;  %v2495_v13 = vld [vmem:[%s3051_s4] sm:$0xff]  }
 0x71c   : > { %1233 = vst.msk [vmem:[#allocation2 + $0x10] sm:$0xff] %vm1230_vm3, %v1223_v15  ;;  %1232 = vst.msk [vmem:[#allocation2 + $0x8] sm:$0xff] %vm1230_vm3, %v1221_v16  ;;  %2372 = vmatmul.mubr.msk.bf16.vlgmr.msra.gmra.mrb[8].mxu0 %vm603_vm1, %v1403_v14  ;;  %2383 = vmatprep.subr.bf16.mxu1 %v2495_v13  ;;  %v2496_v14 = vld [vmem:[%s3051_s4 + $0x8] sm:$0xff]   ;;  %v2497_v15 = vld [vmem:[%s3052_s5] sm:$0xff]  }
 0x71d   : > { %2376 = vmatpush3.bf16.msra.mxu0 %v2493_v18  ;;  %2384 = vmatpush3.bf16.msra.mxu1 %v2495_v13  ;;  %v2498_v16 = vld [vmem:[%s3052_s5 + $0x8] sm:$0xff]   ;;  %v2500_v18 = vld [vmem:[%s3052_s5 + $0x18] sm:$0xff]  }
 0x71e   : > { %2377 = vmatprep.subr.bf16.mxu0 %v2494_v20  ;;  %2385 = vmatprep.subr.bf16.mxu1 %v2496_v14 }
 0x71f   : > { %v1225_v17 = vpop.permute.xlu1 %1224 }
 0x720   : > { %1234 = vst.msk [vmem:[#allocation2 + $0x18] sm:$0xff] %vm1230_vm3, %v1225_v17  ;;  %v2499_v17 = vld [vmem:[%s3052_s5 + $0x10] sm:$0xff]  }
 0x721   : > { %2378 = vmatpush3.bf16.msra.mxu0 %v2494_v20  ;;  %2386 = vmatpush3.bf16.msra.mxu1 %v2496_v14  ;;  %v2501_v20 = vld [vmem:[%s3052_s5 + $0x20] sm:$0xff]  }
 0x722   : > { %2391 = vmatprep.subr.bf16.mxu0 %v2497_v15 }
 0x7ef   : > { %v2373_v21 = vpop.f32.mrb[8].mxu0 }
 0x7f0   : > { %v1456_v22 = vpop.f32.mrb[9].mxu0 }
 0x7f1   : > { %1475 = vrot.lane.b32.xlu0 %v1456_v22, %s2634_s26  ;;  %v2374_v23 = vpop.f32.mrb[10].mxu0 }
 0x7f2   : > { %v1459_v24 = vpop.f32.mrb[11].mxu0 }
 0x7f3   : > { %1477 = vrot.lane.b32.xlu1 %v1459_v24, %s2634_s26 }
 0x7f5   : > { %1479 = vrot.lane.b32.xlu0 %v2373_v21, %s2634_s26  ;;  %v2502_v21 = vld [vmem:[%s3052_s5 + $0x28] sm:$0xff]  }
 0x7f7   : > { %1481 = vrot.lane.b32.xlu1 %v2374_v23, %s2634_s26 }
 0x863   : > { %v1476_v25 = vpop.permute.xlu0 %1475 }
 0x864   : > { %1488 = vst.msk [vmem:[#allocation2] sm:$0xff] %vm1487_vm4, %v1476_v25 }
 0x865   : > { %v1478_v26 = vpop.permute.xlu1 %1477 }
 0x866   : > { %1489 = vst.msk [vmem:[#allocation2 + $0x8] sm:$0xff] %vm1487_vm4, %v1478_v26 }
 0x867   : > { %v1480_v27 = vpop.permute.xlu0 %1479 }
 0x868   : > { %1490 = vst.msk [vmem:[#allocation2 + $0x10] sm:$0xff] %vm1487_vm4, %v1480_v27 }
 0x869   : > { %v1482_v28 = vpop.permute.xlu1 %1481 }
 0x86a   : > { %1491 = vst.msk [vmem:[#allocation2 + $0x18] sm:$0xff] %vm1487_vm4, %v1482_v28 }
 0x86b   : > { %v1492_v29 = vld [vmem:[#allocation2] sm:$0xff] }
 0x86d   : > { %v1493_v30 = vld [vmem:[#allocation2 + $0x8] sm:$0xff] }
 0x86e   : > { %v1502_v31 = vpack.c.bf16 %v1493_v30, %v1492_v29 }
 0x86f   : > { %v1494_v32 = vld [vmem:[#allocation2 + $0x10] sm:$0xff] }
 0x870   : > { %2379 = vmatprep.mubr.msk.bf16.mxu0 %vm1524_vm5, %v1502_v31 }
 0x871   : > { %v1495_v34 = vld [vmem:[#allocation2 + $0x18] sm:$0xff] }
 0x872   : > { %v1503_v35 = vpack.c.bf16 %v1495_v34, %v1494_v32 }
 0x874   : > { %2380 = vmatmul.mubr.msk.bf16.vlgmr.msra.gmra.mrb[12].mxu0 %vm1524_vm5, %v1503_v35 }
 0x875   : > { %2392 = vmatpush3.bf16.msra.mxu0 %v2497_v15 }
 0x876   : > { %2393 = vmatprep.subr.bf16.mxu0 %v2498_v16 }
 0x879   : > { %2394 = vmatpush3.bf16.msra.mxu0 %v2498_v16 }
 0x87a   : > { %2395 = vmatprep.subr.bf16.mxu0 %v2499_v17 }
 0x87d   : > { %2396 = vmatpush3.bf16.msra.mxu0 %v2499_v17 }
 0x87e   : > { %2397 = vmatprep.subr.bf16.mxu0 %v2500_v18 }
 0x881   : > { %2398 = vmatpush3.bf16.msra.mxu0 %v2500_v18 }
 0x882   : > { %2399 = vmatprep.subr.bf16.mxu0 %v2501_v20 }
 0x885   : > { %2400 = vmatpush3.bf16.msra.mxu0 %v2501_v20 }
 0x886   : > { %2401 = vmatprep.subr.bf16.mxu0 %v2502_v21 }
 0x889   : > { %2402 = vmatpush3.bf16.msra.mxu0 %v2502_v21 }
 0x947   : > { %v2381_v10 = vpop.f32.mrb[12].mxu0 }
 0x948   : > { %v1565_v41 = vpop.f32.mrb[13].mxu0  ;;  %v1574_v42 = vadd.f32 %v2381_v10, %v2134_v54 }
 0x949   : > { %v1566_v56 = vadd.f32 %v2134_v54, %v1565_v41  ;;  %v2382_v57 = vpop.f32.mrb[14].mxu0 }
 0x94a   : > { %v1568_v44 = vpop.f32.mrb[15].mxu0  ;;  %v1577_v47 = vadd.f32 %v2382_v57, %v2134_v54  ;;  %v1590_v19 = vadd.f32 %v2206_v43, %v1574_v42  ;;  %v2140_v42 = vld [vmem:[%s3053_s6 + $0x2] ss:$0 sm:$0xff] }
 0x94b   : > { %v1569_v45 = vadd.f32 %v2134_v54, %v1568_v44  ;;  %v1588_v46 = vadd.f32 %v2202_v40, %v1566_v56 }
 0x94c   : > { %v1598_v50 = vsel %vm1524_vm5, %v1590_v19, 0.0  ;;  %v1591_v59 = vadd.f32 %v2207_v38, %v1577_v47 }
 0x94d   : > { %v1592_v55 = vsel %vm1524_vm5, %v1588_v46, 0.0  ;;  %v1589_v48 = vadd.f32 %v2203_v58, %v1569_v45 }
 0x94e   : > { %1593 = vadd.xlane.f32.xlu0 %v1592_v55  ;;  %v1601_v60 = vsel %vm1524_vm5, %v1591_v59, 0.0 }
 0x94f   : > { %v1595_v49 = vsel %vm1524_vm5, %v1589_v48, 0.0 }
 0x950   : > { %1596 = vadd.xlane.f32.xlu1 %v1595_v49  ;;  %v2503_v49 = vld [vmem:[%s3052_s5 + $0x30] sm:$0xff]  }
 0x951   : > { %2403 = vmatprep.subr.bf16.mxu0 %v2503_v49 }
 0x952   : > { %1599 = vadd.xlane.f32.xlu0 %v1598_v50  ;;  %2404 = vmatpush3.bf16.msra.mxu0 %v2503_v49  ;;  %v2504_v50 = vld [vmem:[%s3052_s5 + $0x38] sm:$0xff]  }
 0x953   : > { %2405 = vmatprep.subr.bf16.mxu0 %v2504_v50 }
 0x956   : > { %1602 = vadd.xlane.f32.xlu0 %v1601_v60  ;;  %2406 = vmatpush3.bf16.msra.mxu0 %v2504_v50 }
 0x9db   : > { %v1594_v61 = vpop.xlane.xlu0 %1593 }
 0x9dc   : > { %v1605_v62 = vmul.f32 0.03125, %v1594_v61 }
 0x9dd   : > { %v1597_v63 = vpop.xlane.xlu1 %1596 }
 0x9de   : > { %v2956_v0 = vsub.f32 %v1588_v46, %v1605_v62  ;;  %v1606_v39 = vmul.f32 0.03125, %v1597_v63 }
 0x9df   : > { %v1600_v33 = vpop.xlane.xlu0 %1599 }
 0x9e0   : > { %v1610_v1 = vsub.f32 %v1589_v48, %v1606_v39  ;;  %v1607_v2 = vmul.f32 0.03125, %v1600_v33  ;;  %v1613_v3 = vmul.f32 %v2956_v0, %v2956_v0 }
 0x9e2   : > { %v2960_v52 = vsub.f32 %v1590_v19, %v1607_v2  ;;  %v1617_v51 = vsel %vm1524_vm5, %v1613_v3, 0.0  ;;  %v1614_v5 = vmul.f32 %v1610_v1, %v1610_v1 }
 0x9e3   : > { %1618 = vadd.xlane.f32.xlu0 %v1617_v51  ;;  %v1603_v6 = vpop.xlane.xlu0 %1602 }
 0x9e4   : > { %v1608_v7 = vmul.f32 0.03125, %v1603_v6  ;;  %v1620_v53 = vsel %vm1524_vm5, %v1614_v5, 0.0  ;;  %v1615_v8 = vmul.f32 %v2960_v52, %v2960_v52 }
 0x9e5   : > { %1621 = vadd.xlane.f32.xlu1 %v1620_v53 }
 0x9e6   : > { %v1612_v9 = vsub.f32 %v1591_v59, %v1608_v7  ;;  %v1623_v11 = vsel %vm1524_vm5, %v1615_v8, 0.0  ;;  %v2141_v59 = vld [vmem:[%s3054_s7] ss:$0 sm:$0xff]  ;;  %v2146_v7 = vld [vmem:[%s3053_s6 + $0x3] ss:$0 sm:$0xff] }
 0x9e7   : > { %1624 = vadd.xlane.f32.xlu0 %v1623_v11 }
 0x9e8   : > { %v1616_v12 = vmul.f32 %v1612_v9, %v1612_v9 }
 0x9ea   : > { %v1626_v4 = vsel %vm1524_vm5, %v1616_v12, 0.0 }
 0x9eb   : > { %1627 = vadd.xlane.f32.xlu1 %v1626_v4 }
 0xa70   : > { %v1619_v22 = vpop.xlane.xlu0 %1618 }
 0xa71   : > { %v1629_v23 = vmul.f32 0.03125, %v1619_v22 }
 0xa72   : > { %v1622_v24 = vpop.xlane.xlu1 %1621 }
 0xa73   : > { %v1633_v25 = vadd.f32 1e-05, %v1629_v23  ;;  %v1630_v26 = vmul.f32 0.03125, %v1622_v24 }
 0xa74   : > { %v1625_v27 = vpop.xlane.xlu0 %1624 }
 0xa75   : > { %2569 = vrsqrt.f32 %v1633_v25  ;;  %v1634_v28 = vadd.f32 1e-05, %v1630_v26  ;;  %v1631_v29 = vmul.f32 0.03125, %v1625_v27 }
 0xa77   : > { %2571 = vrsqrt.f32 %v1634_v28  ;;  %v1635_v30 = vadd.f32 1e-05, %v1631_v29 }
 0xa78   : > { %v1628_v31 = vpop.xlane.xlu1 %1627 }
 0xa79   : > { %2573 = vrsqrt.f32 %v1635_v30  ;;  %v1632_v32 = vmul.f32 0.03125, %v1628_v31 }
 0xa7b   : > { %v1636_v34 = vadd.f32 1e-05, %v1632_v32 }
 0xa7d   : > { %2575 = vrsqrt.f32 %v1636_v34 }
 0xa7f   : > { %v2570_v35 = vpop.eup %2569 }
 0xa80   : > { %v1641_v54 = vmul.f32 %v2570_v35, %v2956_v0 }
 0xa81   : > { %v2572_v37 = vpop.eup %2571 }
 0xa82   : > { %v1642_v10 = vmul.f32 %v2572_v37, %v1610_v1  ;;  %v1649_v40 = vmul.f32 %v2139_v36, %v1641_v54 }
 0xa83   : > { %v2574_v41 = vpop.eup %2573 }
 0xa84   : > { %v1643_v56 = vmul.f32 %v2574_v41, %v2960_v52  ;;  %v1650_v57 = vmul.f32 %v2139_v36, %v1642_v10  ;;  %v1657_v58 = vadd.f32 %v2140_v42, %v1649_v40 }
 0xa86   : > { %v1658_v43 = vadd.f32 %v2140_v42, %v1650_v57  ;;  %v1651_v45 = vmul.f32 %v2139_v36, %v1643_v56 }
 0xa87   : > { %v2576_v44 = vpop.eup %2575 }
 0xa88   : > { %v1644_v46 = vmul.f32 %v2576_v44, %v1612_v9  ;;  %v1661_v38 = vpack.c.bf16 %v1658_v43, %v1657_v58  ;;  %v1659_v55 = vadd.f32 %v2140_v42, %v1651_v45 }
 0xa8a   : > { %v1652_v47 = vmul.f32 %v2139_v36, %v1644_v46  ;;  %2387 = vmatprep.mubr.msk.bf16.mxu1 %vm1524_vm5, %v1661_v38 }
 0xa8c   : > { %v1660_v48 = vadd.f32 %v2140_v42, %v1652_v47 }
 0xa8e   : > { %v1662_v19 = vpack.c.bf16 %v1660_v48, %v1659_v55 }
 0xa90   : > { %2388 = vmatmul.mubr.msk.bf16.vlgmr.msra.gmra.mrb[20].mxu1 %vm1524_vm5, %v1662_v19 }
 0xb63   : > { %v2389_v60 = vpop.f32.mrb[20].mxu1 }
 0xb64   : > { %v1735_v61 = vadd.f32 %v2389_v60, %v2141_v59  ;;  %v1726_v62 = vpop.f32.mrb[21].mxu1  ;;  %v2155_v60 = vld [vmem:[%s3053_s6 + $0x4] ss:$0 sm:$0xff] }
 0xb65   : > { %v1727_v63 = vadd.f32 %v2141_v59, %v1726_v62  ;;  %v2390_v0 = vpop.f32.mrb[22].mxu1 }
 0xb66   : > { %v1738_v39 = vadd.f32 %v2390_v0, %v2141_v59  ;;  %v1729_v33 = vpop.f32.mrb[23].mxu1  ;;  %v1743_v2 = vmax.f32 %v1735_v61, 0.0 }
 0xb67   : > { %v1730_v1 = vadd.f32 %v2141_v59, %v1729_v33  ;;  %v1741_v52 = vmax.f32 %v1727_v63, 0.0  ;;  %v2156_v63 = vld [vmem:[%s3053_s6 + $0x5] ss:$0 sm:$0xff] }
 0xb68   : > { %v1744_v3 = vmax.f32 %v1738_v39, 0.0 }
 0xb69   : > { %v1742_v51 = vmax.f32 %v1730_v1, 0.0 }
 0xb6a   : > { %v1746_v5 = vpack.c.bf16 %v1744_v3, %v1743_v2 }
 0xb6b   : > { %v1745_v6 = vpack.c.bf16 %v1742_v51, %v1741_v52 }
 0xb6d   : > { %2407 = vmatprep.mubr.bf16.mxu0 %v1745_v6 }
 0xb6e   : > { %2408 = vmatmul.mubr.bf16.vlgmr.msra.gmra.mrb[16].mxu0 %v1746_v5 }
 0xc41   : > { %v2409_v53 = vpop.f32.mrb[16].mxu0 }
 0xc42   : > { %v1849_v8 = vpop.f32.mrb[17].mxu0  ;;  %v1858_v9 = vadd.f32 %v2409_v53, %v2146_v7 }
 0xc43   : > { %v1850_v11 = vadd.f32 %v2146_v7, %v1849_v8  ;;  %v2410_v12 = vpop.f32.mrb[18].mxu0 }
 0xc44   : > { %v1852_v4 = vpop.f32.mrb[19].mxu0  ;;  %v1861_v13 = vadd.f32 %v2410_v12, %v2146_v7  ;;  %v1866_v18 = vadd.f32 %v1858_v9, %v1659_v55 }
 0xc45   : > { %v1853_v14 = vadd.f32 %v2146_v7, %v1852_v4  ;;  %v1864_v15 = vadd.f32 %v1850_v11, %v1657_v58 }
 0xc46   : > { %v1867_v21 = vadd.f32 %v1861_v13, %v1660_v48  ;;  %v1874_v22 = vsel %vm1524_vm5, %v1866_v18, 0.0 }
 0xc47   : > { %v1868_v16 = vsel %vm1524_vm5, %v1864_v15, 0.0  ;;  %v1865_v17 = vadd.f32 %v1853_v14, %v1658_v43 }
 0xc48   : > { %1869 = vadd.xlane.f32.xlu0 %v1868_v16  ;;  %v1877_v23 = vsel %vm1524_vm5, %v1867_v21, 0.0 }
 0xc49   : > { %v1871_v20 = vsel %vm1524_vm5, %v1865_v17, 0.0 }
 0xc4a   : > { %1872 = vadd.xlane.f32.xlu1 %v1871_v20 }
 0xc4c   : > { %1875 = vadd.xlane.f32.xlu0 %v1874_v22 }
 0xc4e   : > { %1878 = vadd.xlane.f32.xlu1 %v1877_v23 }
 0xcd5   : > { %v1870_v24 = vpop.xlane.xlu0 %1869 }
 0xcd6   : > { %v1880_v25 = vmul.f32 0.03125, %v1870_v24 }
 0xcd7   : > { %v1873_v26 = vpop.xlane.xlu1 %1872 }
 0xcd8   : > { %v1884_v27 = vsub.f32 %v1864_v15, %v1880_v25  ;;  %v1881_v28 = vmul.f32 0.03125, %v1873_v26 }
 0xcd9   : > { %v1876_v29 = vpop.xlane.xlu0 %1875 }
 0xcda   : > { %v1885_v30 = vsub.f32 %v1865_v17, %v1881_v28  ;;  %v1882_v31 = vmul.f32 0.03125, %v1876_v29  ;;  %v1888_v32 = vmul.f32 %v1884_v27, %v1884_v27 }
 0xcdb   : > { %v1879_v34 = vpop.xlane.xlu1 %1878 }
 0xcdc   : > { %v1886_v35 = vsub.f32 %v1866_v18, %v1882_v31  ;;  %v1883_v36 = vmul.f32 0.03125, %v1879_v34  ;;  %v1892_v54 = vsel %vm1524_vm5, %v1888_v32, 0.0  ;;  %v1889_v37 = vmul.f32 %v1885_v30, %v1885_v30 }
 0xcdd   : > { %1893 = vadd.xlane.f32.xlu0 %v1892_v54 }
 0xcde   : > { %v1887_v10 = vsub.f32 %v1867_v21, %v1883_v36  ;;  %v1895_v40 = vsel %vm1524_vm5, %v1889_v37, 0.0  ;;  %v1890_v41 = vmul.f32 %v1886_v35, %v1886_v35 }
 0xcdf   : > { %1896 = vadd.xlane.f32.xlu1 %v1895_v40 }
 0xce0   : > { %v1898_v42 = vsel %vm1524_vm5, %v1890_v41, 0.0  ;;  %v1891_v56 = vmul.f32 %v1887_v10, %v1887_v10 }
 0xce1   : > { %1899 = vadd.xlane.f32.xlu0 %v1898_v42 }
 0xce2   : > { %v1901_v57 = vsel %vm1524_vm5, %v1891_v56, 0.0 }
 0xce3   : > { %1902 = vadd.xlane.f32.xlu1 %v1901_v57 }
 0xd6a   : > { %v1894_v58 = vpop.xlane.xlu0 %1893 }
 0xd6b   : > { %v1904_v43 = vmul.f32 0.03125, %v1894_v58 }
 0xd6c   : > { %v1897_v44 = vpop.xlane.xlu1 %1896 }
 0xd6d   : > { %v1908_v45 = vadd.f32 1e-05, %v1904_v43  ;;  %v1905_v46 = vmul.f32 0.03125, %v1897_v44 }
 0xd6e   : > { %v1900_v38 = vpop.xlane.xlu0 %1899 }
 0xd6f   : > { %2577 = vrsqrt.f32 %v1908_v45  ;;  %v1909_v47 = vadd.f32 1e-05, %v1905_v46  ;;  %v1906_v55 = vmul.f32 0.03125, %v1900_v38 }
 0xd70   : > { %v1903_v48 = vpop.xlane.xlu1 %1902 }
 0xd71   : > { %2579 = vrsqrt.f32 %v1909_v47  ;;  %v1910_v19 = vadd.f32 1e-05, %v1906_v55  ;;  %v1907_v49 = vmul.f32 0.03125, %v1903_v48 }
 0xd73   : > { %2581 = vrsqrt.f32 %v1910_v19  ;;  %v1911_v50 = vadd.f32 1e-05, %v1907_v49 }
 0xd75   : > { %2583 = vrsqrt.f32 %v1911_v50 }
 0xd79   : > { %v2578_v59 = vpop.eup %2577 }
 0xd7a   : > { %v1916_v61 = vmul.f32 %v2578_v59, %v1884_v27 }
 0xd7b   : > { %v2580_v62 = vpop.eup %2579 }
 0xd7c   : > { %v1924_v0 = vmul.f32 %v2155_v60, %v1916_v61  ;;  %v1917_v39 = vmul.f32 %v2580_v62, %v1885_v30 }
 0xd7d   : > { %v2582_v33 = vpop.eup %2581 }
 0xd7e   : > { %v1932_v1 = vadd.f32 %v2156_v63, %v1924_v0  ;;  %v1925_v2 = vmul.f32 %v2155_v60, %v1917_v39  ;;  %v1918_v3 = vmul.f32 %v2582_v33, %v1886_v35 }
 0xd7f   : > { %v2584_v52 = vpop.eup %2583 }
 0xd80   : > { %v2164_v51 = vpack.c.bf16 %v1932_v1, %v1932_v1  ;;  %v1933_v5 = vadd.f32 %v2156_v63, %v1925_v2  ;;  %v1926_v6 = vmul.f32 %v2155_v60, %v1918_v3  ;;  %v1919_v7 = vmul.f32 %v2584_v52, %v1887_v10 }
 0xd82   : > { %1953 = vst.msk [vmem:[%s490_s17] sm:$0xf] %vm1952_vm6, %v2164_v51  ;;  %v2165_v53 = vpack.c.bf16 %v1933_v5, %v1933_v5  ;;  %v1934_v8 = vadd.f32 %v2156_v63, %v1926_v6  ;;  %v1927_v9 = vmul.f32 %v2155_v60, %v1919_v7 }
 0xd84   : > { %1954 = vst.msk [vmem:[%s490_s17 + $0x4] sm:$0xf] %vm1952_vm6, %v2165_v53  ;;  %v2166_v11 = vpack.c.bf16 %v1934_v8, %v1934_v8  ;;  %v1935_v12 = vadd.f32 %v2156_v63, %v1927_v9 }
 0xd86   : > { %1955 = vst.msk [vmem:[%s490_s17 + $0x8] sm:$0xf] %vm1952_vm6, %v2166_v11  ;;  %v2167_v4 = vpack.c.bf16 %v1935_v12, %v1935_v12 }
 0xd88   : > { %1956 = vst.msk [vmem:[%s490_s17 + $0xc] sm:$0xf] %vm1952_vm6, %v2167_v4 }
 0xd89 PF: > { %s18_s9 = sadd.s32 1, %s2623_s9   ;;  %s3056_s27 = smov %s2615_s29 }
 0xd8a   : > { %p15_p10 = scmp.ge.s32.totalorder %s18_s9, 10   ;;  %s3057_s28 = smov %s2619_s30 }
 0xd8b   : > { %s3058_s29 = smov %s3061_s10  ;;  %s3059_s30 = smov %s3065_s11 }
 0xd8c   :  { %17 = sbr.rel (!%p15_p10) target bundleno = 3 (0x3), region = 88 }

</bundles_post_ra>
